<compile_context>
chip_gen: v7x
topology: tpu7x:2x2x1
jax: 0.10.0
libtpu: 0.0.40
codegen_flags: <defaults>
</compile_context>

<pallas_src>
import functools

import jax
import jax.numpy as jnp
from jax.experimental import pallas as pl
from jax.experimental.pallas import tpu as pltpu


def _round_up(n, m):
    return ((n + m - 1) // m) * m


def _cdiv(a, b):
    return (a + b - 1) // b


def _ode_lstm_kernel(x_ref, h_ref, c_ref, ts_ref,
                     wg_ref, bg_ref, w1_ref, b1_ref, w2_ref, b2_ref,
                     newh_ref, newc_ref,
                     xh_s, c_s, *, isz, hsz, hp):
    Hp = hp
    cdt = wg_ref.dtype                 # matmul operand dtype (f32, or bf16)
    TB, Kp = xh_s.shape

    # ---- build [x | h | 0] and lane-padded c directly in VMEM --------------
    # Pad lanes must stay exactly zero so the zero-padded weight rows/columns
    # keep the math identical to the un-padded reference.
    if isz + hsz < Kp:
        xh_s[...] = jnp.zeros(xh_s.shape, xh_s.dtype)
    xh_s[:, :isz] = x_ref[...].astype(cdt)
    xh_s[:, isz:isz + hsz] = h_ref[...].astype(cdt)
    xh = xh_s[...]                     # (TB, Kp)

    if hsz < Hp:
        c_s[...] = jnp.zeros(c_s.shape, c_s.dtype)
    c_s[:, :hsz] = c_ref[...].astype(jnp.float32)
    c = c_s[...]                       # (TB, Hp), pad lanes exactly 0

    # ---- nn.LSTMCell: single fused gate matmul, gate order (i, f, g, o) ----
    gates = jnp.dot(xh, wg_ref[...],
                    preferred_element_type=jnp.float32) + bg_ref[...]   # (TB, 4*Hp)
    i_g = jax.nn.sigmoid(gates[:, 0 * Hp:1 * Hp])
    f_g = jax.nn.sigmoid(gates[:, 1 * Hp:2 * Hp])
    g_g = jnp.tanh(gates[:, 2 * Hp:3 * Hp])
    o_g = jax.nn.sigmoid(gates[:, 3 * Hp:4 * Hp])
    new_c = f_g * c + i_g * g_g
    new_h = o_g * jnp.tanh(new_c)

    # ---- hoisted broadcasts (reused across the unrolled 3-step RK4) --------
    w1 = w1_ref[...]
    w2 = w2_ref[...]
    b1_b = jnp.broadcast_to(b1_ref[...], (TB, Hp))
    b2_b = jnp.broadcast_to(b2_ref[...], (TB, Hp))
    dt = jnp.broadcast_to(ts_ref[...] * (1.0 / 3.0), (TB, Hp))  # per-sample ts/3
    half_dt = dt * 0.5
    sixth_dt = dt * (1.0 / 6.0)

    # ---- f_node: Linear -> Tanh -> Linear (f32 accumulation) ---------------
    # tanh evaluated in the compute dtype: exact no-op for f32, halves EUP
    # work and removes a cast when cdt == bf16 (v6e/v7x).
    def f_node(y):
        pre = jnp.dot(y.astype(cdt), w1, preferred_element_type=jnp.float32) + b1_b
        z = jnp.tanh(pre.astype(cdt))
        return jnp.dot(z, w2, preferred_element_type=jnp.float32) + b2_b

    # ---- solve_fixed: 3 steps of RK4 with dt = ts/3 -------------------------
    y = new_h
    for _ in range(3):
        k1 = f_node(y)
        k2 = f_node(y + k1 * half_dt)
        k3 = f_node(y + k2 * half_dt)
        k4 = f_node(y + k3 * dt)
        y = y + sixth_dt * (k1 + 2.0 * k2 + 2.0 * k3 + k4)

    newh_ref[...] = y.astype(newh_ref.dtype)
    newc_ref[...] = new_c.astype(newc_ref.dtype)


def init_params(key, input_size, hidden_size):
    """Raw parameters mirroring PyTorch (uniform +-1/sqrt(H)), gate order i,f,g,o."""
    ks = jax.random.split(key, 10)
    stdv = 1.0 / jnp.sqrt(hidden_size)
    u = lambda k, shape: jax.random.uniform(k, shape, jnp.float32, -stdv, stdv)
    return {
        'w_ih': u(ks[0], (input_size, 4 * hidden_size)),      # (I, 4H), pre-transposed
        'w_hh': u(ks[1], (hidden_size, 4 * hidden_size)),     # (H, 4H)
        'b':    (u(ks[2], (1, 4 * hidden_size)) + u(ks[3], (1, 4 * hidden_size))),
        'w1':   u(ks[4], (hidden_size, hidden_size)),
        'b1':   u(ks[5], (1, hidden_size)),
        'w2':   u(ks[6], (hidden_size, hidden_size)),
        'b2':   u(ks[7], (1, hidden_size)),
    }


def pack_params(p, input_size, hidden_size, compute_dtype=jnp.float32):
    """Pre-concatenate the gate weights and zero-pad to 128-lane tiles (once, at init).

    compute_dtype=jnp.bfloat16 is recommended on v5e/v6e/v7x (the MXU is
    bf16-native on all three); accumulation stays f32 inside the kernel.
    Padded rows/columns MUST stay exactly zero (correctness invariant).
    """
    I, H = input_size, hidden_size
    Hp = _round_up(H, 128)
    Kp = _round_up(I + H, 128)          # tight K padding (review item #1)

    wg = jnp.zeros((Kp, 4 * Hp), jnp.float32)
    bg = jnp.zeros((1, 4 * Hp), jnp.float32)
    for g in range(4):  # keep PyTorch gate order i, f, g, o; lane-align each gate
        wg = wg.at[:I, g * Hp:g * Hp + H].set(p['w_ih'][:, g * H:(g + 1) * H])
        wg = wg.at[I:I + H, g * Hp:g * Hp + H].set(p['w_hh'][:, g * H:(g + 1) * H])
        bg = bg.at[:, g * Hp:g * Hp + H].set(p['b'][:, g * H:(g + 1) * H])

    w1 = jnp.zeros((Hp, Hp), jnp.float32).at[:H, :H].set(p['w1'])
    b1 = jnp.zeros((1, Hp), jnp.float32).at[:, :H].set(p['b1'])
    w2 = jnp.zeros((Hp, Hp), jnp.float32).at[:H, :H].set(p['w2'])
    b2 = jnp.zeros((1, Hp), jnp.float32).at[:, :H].set(p['b2'])

    cdt = compute_dtype
    return {
        'wg': wg.astype(cdt), 'bg': bg,                 # biases stay f32 (post-accum add)
        'w1': w1.astype(cdt), 'b1': b1,
        'w2': w2.astype(cdt), 'b2': b2,
    }


def ode_lstm_cell(x, h, c, ts, packed, *, block_b=None):
    """Forward pass of OdeLstmCell(solver_type='fixed_rk4')."""
    B, I = x.shape
    H = h.shape[1]
    Hp = packed['w1'].shape[0]
    Kp = packed['wg'].shape[0]
    cdt = packed['wg'].dtype
    bpe = jnp.dtype(cdt).itemsize

    # ---- generation-aware VMEM budget --------------------------------------
    try:
        vmem_cap = int(pltpu.get_tpu_info().vmem_capacity_bytes)
        if vmem_cap <= 0:
            vmem_cap = 64 << 20
    except Exception:
        vmem_cap = 64 << 20                       # conservative (v7x per-TC)
    budget_cap = max(24 << 20, min(int(vmem_cap * 0.75), vmem_cap - (16 << 20)))
    if block_b is None:
        block_b = 512 if vmem_cap >= (96 << 20) else 256   # v5e/v6e vs v7x

    # Weight bytes (one VMEM copy); biases stay f32.
    wbytes_1 = (Kp * 4 * Hp + 2 * Hp * Hp) * bpe + (4 * Hp + 2 * Hp) * 4
    # Single-buffer the weights only when two resident copies would pressure
    # the budget (large Hp on v7x); constant index_map means one DMA either way.
    single_buf_w = (2 * wbytes_1) > (budget_cap // 4)
    wbytes = wbytes_1 if single_buf_w else 2 * wbytes_1

    def tiles_bytes(tb):
        inputs = tb * (I + H + H + 1) * 4                  # x, h, c, ts streamed (f32)
        outputs = 2 * tb * Hp * 4                          # new_h, new_c
        scratch = tb * Kp * bpe + tb * Hp * 4              # xh_s, c_s
        interm = tb * (4 * Hp + 12 * Hp) * 4               # gates + ~12 live f32 temps
        return 2 * (inputs + outputs) + scratch + interm   # double-buffered in/out

    # ---- batch tile: balance tile count to minimize padding, then fit VMEM --
    TB = min(block_b, _round_up(B, 8))
    n_tiles = max(1, _cdiv(B, TB))
    TB = _round_up(_cdiv(B, n_tiles), 8)
    while TB > 8 and wbytes + tiles_bytes(TB) > budget_cap:
        TB = max(8, _round_up(TB // 2, 8))
    grid_b = _cdiv(B, TB)

    vmem_limit = int(min(budget_cap, max(wbytes + tiles_bytes(TB) + (8 << 20), 32 << 20)))

    ts2 = jnp.asarray(ts, jnp.float32).reshape(B, 1)

    kernel = functools.partial(_ode_lstm_kernel, isz=I, hsz=H, hp=Hp)

    def bspec(cols):
        return pl.BlockSpec((TB, cols), lambda i: (i, 0))

    def wspec(shape):
        if single_buf_w:
            return pl.BlockSpec(shape, lambda i: (0, 0), pipeline_mode=pl.Buffered(1))
        return pl.BlockSpec(shape, lambda i: (0, 0))

    new_h_p, new_c_p = pl.pallas_call(
        kernel,
        grid=(grid_b,),
        out_shape=(jax.ShapeDtypeStruct((B, Hp), jnp.float32),
                   jax.ShapeDtypeStruct((B, Hp), jnp.float32)),
        in_specs=[bspec(I), bspec(H), bspec(H), bspec(1),
                  wspec(packed['wg'].shape), wspec(packed['bg'].shape),
                  wspec(packed['w1'].shape), wspec(packed['b1'].shape),
                  wspec(packed['w2'].shape), wspec(packed['b2'].shape)],
        out_specs=(bspec(Hp), bspec(Hp)),
        scratch_shapes=[pltpu.VMEM((TB, Kp), cdt),          # [x | h | 0] staging
                        pltpu.VMEM((TB, Hp), jnp.float32)], # lane-padded c
        compiler_params=pltpu.CompilerParams(
            dimension_semantics=("parallel",),
            vmem_limit_bytes=vmem_limit),
    )(x, h, c, ts2,
      packed['wg'], packed['bg'],
      packed['w1'], packed['b1'], packed['w2'], packed['b2'])

    return new_h_p[:, :H], new_c_p[:, :H]


def _reference(x, h, c, ts, p):
    """Pure-JAX reference (mirrors the PyTorch module, raw unpadded params)."""
    H = h.shape[1]
    gates = (jnp.dot(x, p['w_ih'], preferred_element_type=jnp.float32)
             + jnp.dot(h, p['w_hh'], preferred_element_type=jnp.float32) + p['b'])
    i = jax.nn.sigmoid(gates[:, :H])
    f = jax.nn.sigmoid(gates[:, H:2 * H])
    g = jnp.tanh(gates[:, 2 * H:3 * H])
    o = jax.nn.sigmoid(gates[:, 3 * H:])
    new_c = f * c + i * g
    new_h = o * jnp.tanh(new_c)

    def f_node(y):
        z = jnp.tanh(jnp.dot(y, p['w1'], preferred_element_type=jnp.float32) + p['b1'])
        return jnp.dot(z, p['w2'], preferred_element_type=jnp.float32) + p['b2']

    dt = ts.reshape(-1, 1) / 3.0
    y = new_h
    for _ in range(3):
        k1 = f_node(y)
        k2 = f_node(y + k1 * dt * 0.5)
        k3 = f_node(y + k2 * dt * 0.5)
        k4 = f_node(y + k3 * dt)
        y = y + dt * (k1 + 2 * k2 + 2 * k3 + k4) / 6.0
    return y, new_c


if __name__ == "__main__":
    B, I, H = 8, 16, 32
    key = jax.random.PRNGKey(0)
    k_x, k_h, k_c, k_t, k_p = jax.random.split(key, 5)

    x = jax.random.normal(k_x, (B, I), jnp.float32)
    h0 = jax.random.normal(k_h, (B, H), jnp.float32)
    c0 = jax.random.normal(k_c, (B, H), jnp.float32)
    ts = jax.random.uniform(k_t, (B,), jnp.float32, 0.1, 1.0)

    params = init_params(k_p, I, H)
    # f32 operands here so the 1e-4 validation holds; pass
    # compute_dtype=jnp.bfloat16 in production on v5e/v6e/v7x (loosen tolerance).
    packed = pack_params(params, I, H, compute_dtype=jnp.float32)

    new_h, new_c = ode_lstm_cell(x, h0, c0, ts, packed)
    jax.block_until_ready((new_h, new_c))

    ref_h, ref_c = _reference(x, h0, c0, ts, params)
    assert jnp.allclose(new_h, ref_h, atol=1e-4, rtol=1e-4), \
        float(jnp.max(jnp.abs(new_h - ref_h)))
    assert jnp.allclose(new_c, ref_c, atol=1e-4, rtol=1e-4), \
        float(jnp.max(jnp.abs(new_c - ref_c)))
    print("KERNEL_OK")
</pallas_src>

<mosaic_0001>
module attributes {stable_mosaic.version = 11 : i64} {
  func.func @_ode_lstm_kernel(%arg0: i32, %arg1: memref<8x16xf32, #tpu.memory_space<vmem>>, %arg2: memref<8x32xf32, #tpu.memory_space<vmem>>, %arg3: memref<8x32xf32, #tpu.memory_space<vmem>>, %arg4: memref<8x1xf32, #tpu.memory_space<vmem>>, %arg5: memref<128x512xf32, #tpu.memory_space<vmem>>, %arg6: memref<1x512xf32, #tpu.memory_space<vmem>>, %arg7: memref<128x128xf32, #tpu.memory_space<vmem>>, %arg8: memref<1x128xf32, #tpu.memory_space<vmem>>, %arg9: memref<128x128xf32, #tpu.memory_space<vmem>>, %arg10: memref<1x128xf32, #tpu.memory_space<vmem>>, %arg11: memref<8x128xf32, #tpu.memory_space<vmem>>, %arg12: memref<8x128xf32, #tpu.memory_space<vmem>>, %arg13: memref<8x128xf32, #tpu.memory_space<vmem>>, %arg14: memref<8x128xf32, #tpu.memory_space<vmem>>) attributes {dimension_semantics = [#tpu.dimension_semantics<parallel>], iteration_bounds = array<i64: 1>, scalar_prefetch = 0 : i64, scratch_operands = 2 : i64, tpu.core_type = #tpu.core_type<tc>, window_params = [{transform_indices = @transform_0, window_bounds = array<i64: 8, 16>}, {transform_indices = @transform_1, window_bounds = array<i64: 8, 32>}, {transform_indices = @transform_2, window_bounds = array<i64: 8, 32>}, {transform_indices = @transform_3, window_bounds = array<i64: 8, 1>}, {pipeline_mode = #tpu.pipeline_mode<synchronous>, transform_indices = @transform_4, window_bounds = array<i64: 128, 512>}, {pipeline_mode = #tpu.pipeline_mode<synchronous>, transform_indices = @transform_5, window_bounds = array<i64: 1, 512>}, {pipeline_mode = #tpu.pipeline_mode<synchronous>, transform_indices = @transform_6, window_bounds = array<i64: 128, 128>}, {pipeline_mode = #tpu.pipeline_mode<synchronous>, transform_indices = @transform_7, window_bounds = array<i64: 1, 128>}, {pipeline_mode = #tpu.pipeline_mode<synchronous>, transform_indices = @transform_8, window_bounds = array<i64: 128, 128>}, {pipeline_mode = #tpu.pipeline_mode<synchronous>, transform_indices = @transform_9, window_bounds = array<i64: 1, 128>}, {transform_indices = @transform_10, window_bounds = array<i64: 8, 128>}, {transform_indices = @transform_11, window_bounds = array<i64: 8, 128>}]} {
    %cst = arith.constant 0.000000e+00 : f32
    %0 = vector.broadcast %cst : f32 to vector<8x128xf32>
    %c0 = arith.constant 0 : index
    %c0_0 = arith.constant 0 : index
    %1 = vector.load %arg13[%c0, %c0_0] : memref<8x128xf32, #tpu.memory_space<vmem>>, vector<8x128xf32>
    tpu.vector_store %arg13[%c0, %c0_0], %0 {strides = array<i32>} : memref<8x128xf32, #tpu.memory_space<vmem>>, vector<8x128xf32>,
    %c0_1 = arith.constant 0 : index
    %c0_2 = arith.constant 0 : index
    %2 = vector.load %arg1[%c0_1, %c0_2] : memref<8x16xf32, #tpu.memory_space<vmem>>, vector<8x16xf32>
    %c0_3 = arith.constant 0 : index
    %c0_4 = arith.constant 0 : index
    %3 = vector.load %arg13[%c0_3, %c0_4] : memref<8x128xf32, #tpu.memory_space<vmem>>, vector<8x16xf32>
    tpu.vector_store %arg13[%c0_3, %c0_4], %2 {strides = array<i32>} : memref<8x128xf32, #tpu.memory_space<vmem>>, vector<8x16xf32>,
    %c0_5 = arith.constant 0 : index
    %c0_6 = arith.constant 0 : index
    %4 = vector.load %arg2[%c0_5, %c0_6] : memref<8x32xf32, #tpu.memory_space<vmem>>, vector<8x32xf32>
    %c0_7 = arith.constant 0 : index
    %c16 = arith.constant 16 : index
    %5 = vector.load %arg13[%c0_7, %c16] : memref<8x128xf32, #tpu.memory_space<vmem>>, vector<8x32xf32>
    tpu.vector_store %arg13[%c0_7, %c16], %4 {strides = array<i32>} : memref<8x128xf32, #tpu.memory_space<vmem>>, vector<8x32xf32>,
    %c0_8 = arith.constant 0 : index
    %c0_9 = arith.constant 0 : index
    %6 = vector.load %arg13[%c0_8, %c0_9] : memref<8x128xf32, #tpu.memory_space<vmem>>, vector<8x128xf32>
    %cst_10 = arith.constant 0.000000e+00 : f32
    %7 = vector.broadcast %cst_10 : f32 to vector<8x128xf32>
    %c0_11 = arith.constant 0 : index
    %c0_12 = arith.constant 0 : index
    %8 = vector.load %arg14[%c0_11, %c0_12] : memref<8x128xf32, #tpu.memory_space<vmem>>, vector<8x128xf32>
    tpu.vector_store %arg14[%c0_11, %c0_12], %7 {strides = array<i32>} : memref<8x128xf32, #tpu.memory_space<vmem>>, vector<8x128xf32>,
    %c0_13 = arith.constant 0 : index
    %c0_14 = arith.constant 0 : index
    %9 = vector.load %arg3[%c0_13, %c0_14] : memref<8x32xf32, #tpu.memory_space<vmem>>, vector<8x32xf32>
    %c0_15 = arith.constant 0 : index
    %c0_16 = arith.constant 0 : index
    %10 = vector.load %arg14[%c0_15, %c0_16] : memref<8x128xf32, #tpu.memory_space<vmem>>, vector<8x32xf32>
    tpu.vector_store %arg14[%c0_15, %c0_16], %9 {strides = array<i32>} : memref<8x128xf32, #tpu.memory_space<vmem>>, vector<8x32xf32>,
    %c0_17 = arith.constant 0 : index
    %c0_18 = arith.constant 0 : index
    %11 = vector.load %arg14[%c0_17, %c0_18] : memref<8x128xf32, #tpu.memory_space<vmem>>, vector<8x128xf32>
    %c0_19 = arith.constant 0 : index
    %c0_20 = arith.constant 0 : index
    %12 = vector.load %arg5[%c0_19, %c0_20] : memref<128x512xf32, #tpu.memory_space<vmem>>, vector<128x512xf32>
    %cst_21 = arith.constant dense<0.000000e+00> : vector<8x512xf32>
    %13 = tpu.matmul %6, %12, %cst_21 {dimension_numbers = #tpu.dot_dimension_numbers<[1], [0], [0], [1], [0, 0, 1, 1], [], []>} : vector<8x128xf32>, vector<128x512xf32>, vector<8x512xf32> -> vector<8x512xf32>
    %c0_22 = arith.constant 0 : index
    %c0_23 = arith.constant 0 : index
    %14 = vector.load %arg6[%c0_22, %c0_23] : memref<1x512xf32, #tpu.memory_space<vmem>>, vector<1x512xf32>
    %15 = vector.broadcast %14 : vector<1x512xf32> to vector<8x512xf32>
    %16 = arith.addf %13, %15 : vector<8x512xf32>
    %17 = vector.extract_strided_slice %16 {offsets = [0, 0], sizes = [8, 128], strides = [1, 1]} : vector<8x512xf32> to vector<8x128xf32>
    %18 = arith.negf %17 : vector<8x128xf32>
    %19 = math.exp %18 : vector<8x128xf32>
    %cst_24 = arith.constant 1.000000e+00 : f32
    %20 = vector.broadcast %cst_24 : f32 to vector<8x128xf32>
    %21 = arith.addf %20, %19 : vector<8x128xf32>
    %22 = arith.divf %20, %21 : vector<8x128xf32>
    %23 = vector.extract_strided_slice %16 {offsets = [0, 128], sizes = [8, 128], strides = [1, 1]} : vector<8x512xf32> to vector<8x128xf32>
    %24 = arith.negf %23 : vector<8x128xf32>
    %25 = math.exp %24 : vector<8x128xf32>
    %cst_25 = arith.constant 1.000000e+00 : f32
    %26 = vector.broadcast %cst_25 : f32 to vector<8x128xf32>
    %27 = arith.addf %26, %25 : vector<8x128xf32>
    %28 = arith.divf %26, %27 : vector<8x128xf32>
    %29 = vector.extract_strided_slice %16 {offsets = [0, 256], sizes = [8, 128], strides = [1, 1]} : vector<8x512xf32> to vector<8x128xf32>
    %30 = math.tanh %29 : vector<8x128xf32>
    %31 = vector.extract_strided_slice %16 {offsets = [0, 384], sizes = [8, 128], strides = [1, 1]} : vector<8x512xf32> to vector<8x128xf32>
    %32 = arith.negf %31 : vector<8x128xf32>
    %33 = math.exp %32 : vector<8x128xf32>
    %cst_26 = arith.constant 1.000000e+00 : f32
    %34 = vector.broadcast %cst_26 : f32 to vector<8x128xf32>
    %35 = arith.addf %34, %33 : vector<8x128xf32>
    %36 = arith.divf %34, %35 : vector<8x128xf32>
    %37 = arith.mulf %28, %11 : vector<8x128xf32>
    %38 = arith.mulf %22, %30 : vector<8x128xf32>
    %39 = arith.addf %37, %38 : vector<8x128xf32>
    %40 = math.tanh %39 : vector<8x128xf32>
    %41 = arith.mulf %36, %40 : vector<8x128xf32>
    %c0_27 = arith.constant 0 : index
    %c0_28 = arith.constant 0 : index
    %42 = vector.load %arg7[%c0_27, %c0_28] : memref<128x128xf32, #tpu.memory_space<vmem>>, vector<128x128xf32>
    %c0_29 = arith.constant 0 : index
    %c0_30 = arith.constant 0 : index
    %43 = vector.load %arg9[%c0_29, %c0_30] : memref<128x128xf32, #tpu.memory_space<vmem>>, vector<128x128xf32>
    %c0_31 = arith.constant 0 : index
    %c0_32 = arith.constant 0 : index
    %44 = vector.load %arg8[%c0_31, %c0_32] : memref<1x128xf32, #tpu.memory_space<vmem>>, vector<1x128xf32>
    %45 = vector.shape_cast %44 : vector<1x128xf32> to vector<1x128xf32>
    %46 = vector.broadcast %45 : vector<1x128xf32> to vector<8x128xf32>
    %c0_33 = arith.constant 0 : index
    %c0_34 = arith.constant 0 : index
    %47 = vector.load %arg10[%c0_33, %c0_34] : memref<1x128xf32, #tpu.memory_space<vmem>>, vector<1x128xf32>
    %48 = vector.shape_cast %47 : vector<1x128xf32> to vector<1x128xf32>
    %49 = vector.broadcast %48 : vector<1x128xf32> to vector<8x128xf32>
    %c0_35 = arith.constant 0 : index
    %c0_36 = arith.constant 0 : index
    %50 = vector.load %arg4[%c0_35, %c0_36] : memref<8x1xf32, #tpu.memory_space<vmem>>, vector<8x1xf32>
    %cst_37 = arith.constant 0.333333343 : f32
    %51 = vector.broadcast %cst_37 : f32 to vector<8x1xf32>
    %52 = arith.mulf %50, %51 : vector<8x1xf32>
    %53 = vector.shape_cast %52 : vector<8x1xf32> to vector<8x1xf32>
    %54 = vector.broadcast %53 : vector<8x1xf32> to vector<8x128xf32>
    %cst_38 = arith.constant 5.000000e-01 : f32
    %55 = vector.broadcast %cst_38 : f32 to vector<8x128xf32>
    %56 = arith.mulf %54, %55 : vector<8x128xf32>
    %cst_39 = arith.constant 0.166666672 : f32
    %57 = vector.broadcast %cst_39 : f32 to vector<8x128xf32>
    %58 = arith.mulf %54, %57 : vector<8x128xf32>
    %cst_40 = arith.constant dense<0.000000e+00> : vector<8x128xf32>
    %59 = tpu.matmul %41, %42, %cst_40 {dimension_numbers = #tpu.dot_dimension_numbers<[1], [0], [0], [1], [0, 0, 1, 1], [], []>} : vector<8x128xf32>, vector<128x128xf32>, vector<8x128xf32> -> vector<8x128xf32>
    %60 = arith.addf %59, %46 : vector<8x128xf32>
    %61 = math.tanh %60 : vector<8x128xf32>
    %cst_41 = arith.constant dense<0.000000e+00> : vector<8x128xf32>
    %62 = tpu.matmul %61, %43, %cst_41 {dimension_numbers = #tpu.dot_dimension_numbers<[1], [0], [0], [1], [0, 0, 1, 1], [], []>} : vector<8x128xf32>, vector<128x128xf32>, vector<8x128xf32> -> vector<8x128xf32>
    %63 = arith.addf %62, %49 : vector<8x128xf32>
    %64 = arith.mulf %63, %56 : vector<8x128xf32>
    %65 = arith.addf %41, %64 : vector<8x128xf32>
    %cst_42 = arith.constant dense<0.000000e+00> : vector<8x128xf32>
    %66 = tpu.matmul %65, %42, %cst_42 {dimension_numbers = #tpu.dot_dimension_numbers<[1], [0], [0], [1], [0, 0, 1, 1], [], []>} : vector<8x128xf32>, vector<128x128xf32>, vector<8x128xf32> -> vector<8x128xf32>
    %67 = arith.addf %66, %46 : vector<8x128xf32>
    %68 = math.tanh %67 : vector<8x128xf32>
    %cst_43 = arith.constant dense<0.000000e+00> : vector<8x128xf32>
    %69 = tpu.matmul %68, %43, %cst_43 {dimension_numbers = #tpu.dot_dimension_numbers<[1], [0], [0], [1], [0, 0, 1, 1], [], []>} : vector<8x128xf32>, vector<128x128xf32>, vector<8x128xf32> -> vector<8x128xf32>
    %70 = arith.addf %69, %49 : vector<8x128xf32>
    %71 = arith.mulf %70, %56 : vector<8x128xf32>
    %72 = arith.addf %41, %71 : vector<8x128xf32>
    %cst_44 = arith.constant dense<0.000000e+00> : vector<8x128xf32>
    %73 = tpu.matmul %72, %42, %cst_44 {dimension_numbers = #tpu.dot_dimension_numbers<[1], [0], [0], [1], [0, 0, 1, 1], [], []>} : vector<8x128xf32>, vector<128x128xf32>, vector<8x128xf32> -> vector<8x128xf32>
    %74 = arith.addf %73, %46 : vector<8x128xf32>
    %75 = math.tanh %74 : vector<8x128xf32>
    %cst_45 = arith.constant dense<0.000000e+00> : vector<8x128xf32>
    %76 = tpu.matmul %75, %43, %cst_45 {dimension_numbers = #tpu.dot_dimension_numbers<[1], [0], [0], [1], [0, 0, 1, 1], [], []>} : vector<8x128xf32>, vector<128x128xf32>, vector<8x128xf32> -> vector<8x128xf32>
    %77 = arith.addf %76, %49 : vector<8x128xf32>
    %78 = arith.mulf %77, %54 : vector<8x128xf32>
    %79 = arith.addf %41, %78 : vector<8x128xf32>
    %cst_46 = arith.constant dense<0.000000e+00> : vector<8x128xf32>
    %80 = tpu.matmul %79, %42, %cst_46 {dimension_numbers = #tpu.dot_dimension_numbers<[1], [0], [0], [1], [0, 0, 1, 1], [], []>} : vector<8x128xf32>, vector<128x128xf32>, vector<8x128xf32> -> vector<8x128xf32>
    %81 = arith.addf %80, %46 : vector<8x128xf32>
    %82 = math.tanh %81 : vector<8x128xf32>
    %cst_47 = arith.constant dense<0.000000e+00> : vector<8x128xf32>
    %83 = tpu.matmul %82, %43, %cst_47 {dimension_numbers = #tpu.dot_dimension_numbers<[1], [0], [0], [1], [0, 0, 1, 1], [], []>} : vector<8x128xf32>, vector<128x128xf32>, vector<8x128xf32> -> vector<8x128xf32>
    %84 = arith.addf %83, %49 : vector<8x128xf32>
    %cst_48 = arith.constant 2.000000e+00 : f32
    %85 = vector.broadcast %cst_48 : f32 to vector<8x128xf32>
    %86 = arith.mulf %85, %70 : vector<8x128xf32>
    %87 = arith.addf %63, %86 : vector<8x128xf32>
    %cst_49 = arith.constant 2.000000e+00 : f32
    %88 = vector.broadcast %cst_49 : f32 to vector<8x128xf32>
    %89 = arith.mulf %88, %77 : vector<8x128xf32>
    %90 = arith.addf %87, %89 : vector<8x128xf32>
    %91 = arith.addf %90, %84 : vector<8x128xf32>
    %92 = arith.mulf %58, %91 : vector<8x128xf32>
    %93 = arith.addf %41, %92 : vector<8x128xf32>
    %cst_50 = arith.constant dense<0.000000e+00> : vector<8x128xf32>
    %94 = tpu.matmul %93, %42, %cst_50 {dimension_numbers = #tpu.dot_dimension_numbers<[1], [0], [0], [1], [0, 0, 1, 1], [], []>} : vector<8x128xf32>, vector<128x128xf32>, vector<8x128xf32> -> vector<8x128xf32>
    %95 = arith.addf %94, %46 : vector<8x128xf32>
    %96 = math.tanh %95 : vector<8x128xf32>
    %cst_51 = arith.constant dense<0.000000e+00> : vector<8x128xf32>
    %97 = tpu.matmul %96, %43, %cst_51 {dimension_numbers = #tpu.dot_dimension_numbers<[1], [0], [0], [1], [0, 0, 1, 1], [], []>} : vector<8x128xf32>, vector<128x128xf32>, vector<8x128xf32> -> vector<8x128xf32>
    %98 = arith.addf %97, %49 : vector<8x128xf32>
    %99 = arith.mulf %98, %56 : vector<8x128xf32>
    %100 = arith.addf %93, %99 : vector<8x128xf32>
    %cst_52 = arith.constant dense<0.000000e+00> : vector<8x128xf32>
    %101 = tpu.matmul %100, %42, %cst_52 {dimension_numbers = #tpu.dot_dimension_numbers<[1], [0], [0], [1], [0, 0, 1, 1], [], []>} : vector<8x128xf32>, vector<128x128xf32>, vector<8x128xf32> -> vector<8x128xf32>
    %102 = arith.addf %101, %46 : vector<8x128xf32>
    %103 = math.tanh %102 : vector<8x128xf32>
    %cst_53 = arith.constant dense<0.000000e+00> : vector<8x128xf32>
    %104 = tpu.matmul %103, %43, %cst_53 {dimension_numbers = #tpu.dot_dimension_numbers<[1], [0], [0], [1], [0, 0, 1, 1], [], []>} : vector<8x128xf32>, vector<128x128xf32>, vector<8x128xf32> -> vector<8x128xf32>
    %105 = arith.addf %104, %49 : vector<8x128xf32>
    %106 = arith.mulf %105, %56 : vector<8x128xf32>
    %107 = arith.addf %93, %106 : vector<8x128xf32>
    %cst_54 = arith.constant dense<0.000000e+00> : vector<8x128xf32>
    %108 = tpu.matmul %107, %42, %cst_54 {dimension_numbers = #tpu.dot_dimension_numbers<[1], [0], [0], [1], [0, 0, 1, 1], [], []>} : vector<8x128xf32>, vector<128x128xf32>, vector<8x128xf32> -> vector<8x128xf32>
    %109 = arith.addf %108, %46 : vector<8x128xf32>
    %110 = math.tanh %109 : vector<8x128xf32>
    %cst_55 = arith.constant dense<0.000000e+00> : vector<8x128xf32>
    %111 = tpu.matmul %110, %43, %cst_55 {dimension_numbers = #tpu.dot_dimension_numbers<[1], [0], [0], [1], [0, 0, 1, 1], [], []>} : vector<8x128xf32>, vector<128x128xf32>, vector<8x128xf32> -> vector<8x128xf32>
    %112 = arith.addf %111, %49 : vector<8x128xf32>
    %113 = arith.mulf %112, %54 : vector<8x128xf32>
    %114 = arith.addf %93, %113 : vector<8x128xf32>
    %cst_56 = arith.constant dense<0.000000e+00> : vector<8x128xf32>
    %115 = tpu.matmul %114, %42, %cst_56 {dimension_numbers = #tpu.dot_dimension_numbers<[1], [0], [0], [1], [0, 0, 1, 1], [], []>} : vector<8x128xf32>, vector<128x128xf32>, vector<8x128xf32> -> vector<8x128xf32>
    %116 = arith.addf %115, %46 : vector<8x128xf32>
    %117 = math.tanh %116 : vector<8x128xf32>
    %cst_57 = arith.constant dense<0.000000e+00> : vector<8x128xf32>
    %118 = tpu.matmul %117, %43, %cst_57 {dimension_numbers = #tpu.dot_dimension_numbers<[1], [0], [0], [1], [0, 0, 1, 1], [], []>} : vector<8x128xf32>, vector<128x128xf32>, vector<8x128xf32> -> vector<8x128xf32>
    %119 = arith.addf %118, %49 : vector<8x128xf32>
    %cst_58 = arith.constant 2.000000e+00 : f32
    %120 = vector.broadcast %cst_58 : f32 to vector<8x128xf32>
    %121 = arith.mulf %120, %105 : vector<8x128xf32>
    %122 = arith.addf %98, %121 : vector<8x128xf32>
    %cst_59 = arith.constant 2.000000e+00 : f32
    %123 = vector.broadcast %cst_59 : f32 to vector<8x128xf32>
    %124 = arith.mulf %123, %112 : vector<8x128xf32>
    %125 = arith.addf %122, %124 : vector<8x128xf32>
    %126 = arith.addf %125, %119 : vector<8x128xf32>
    %127 = arith.mulf %58, %126 : vector<8x128xf32>
    %128 = arith.addf %93, %127 : vector<8x128xf32>
    %cst_60 = arith.constant dense<0.000000e+00> : vector<8x128xf32>
    %129 = tpu.matmul %128, %42, %cst_60 {dimension_numbers = #tpu.dot_dimension_numbers<[1], [0], [0], [1], [0, 0, 1, 1], [], []>} : vector<8x128xf32>, vector<128x128xf32>, vector<8x128xf32> -> vector<8x128xf32>
    %130 = arith.addf %129, %46 : vector<8x128xf32>
    %131 = math.tanh %130 : vector<8x128xf32>
    %cst_61 = arith.constant dense<0.000000e+00> : vector<8x128xf32>
    %132 = tpu.matmul %131, %43, %cst_61 {dimension_numbers = #tpu.dot_dimension_numbers<[1], [0], [0], [1], [0, 0, 1, 1], [], []>} : vector<8x128xf32>, vector<128x128xf32>, vector<8x128xf32> -> vector<8x128xf32>
    %133 = arith.addf %132, %49 : vector<8x128xf32>
    %134 = arith.mulf %133, %56 : vector<8x128xf32>
    %135 = arith.addf %128, %134 : vector<8x128xf32>
    %cst_62 = arith.constant dense<0.000000e+00> : vector<8x128xf32>
    %136 = tpu.matmul %135, %42, %cst_62 {dimension_numbers = #tpu.dot_dimension_numbers<[1], [0], [0], [1], [0, 0, 1, 1], [], []>} : vector<8x128xf32>, vector<128x128xf32>, vector<8x128xf32> -> vector<8x128xf32>
    %137 = arith.addf %136, %46 : vector<8x128xf32>
    %138 = math.tanh %137 : vector<8x128xf32>
    %cst_63 = arith.constant dense<0.000000e+00> : vector<8x128xf32>
    %139 = tpu.matmul %138, %43, %cst_63 {dimension_numbers = #tpu.dot_dimension_numbers<[1], [0], [0], [1], [0, 0, 1, 1], [], []>} : vector<8x128xf32>, vector<128x128xf32>, vector<8x128xf32> -> vector<8x128xf32>
    %140 = arith.addf %139, %49 : vector<8x128xf32>
    %141 = arith.mulf %140, %56 : vector<8x128xf32>
    %142 = arith.addf %128, %141 : vector<8x128xf32>
    %cst_64 = arith.constant dense<0.000000e+00> : vector<8x128xf32>
    %143 = tpu.matmul %142, %42, %cst_64 {dimension_numbers = #tpu.dot_dimension_numbers<[1], [0], [0], [1], [0, 0, 1, 1], [], []>} : vector<8x128xf32>, vector<128x128xf32>, vector<8x128xf32> -> vector<8x128xf32>
    %144 = arith.addf %143, %46 : vector<8x128xf32>
    %145 = math.tanh %144 : vector<8x128xf32>
    %cst_65 = arith.constant dense<0.000000e+00> : vector<8x128xf32>
    %146 = tpu.matmul %145, %43, %cst_65 {dimension_numbers = #tpu.dot_dimension_numbers<[1], [0], [0], [1], [0, 0, 1, 1], [], []>} : vector<8x128xf32>, vector<128x128xf32>, vector<8x128xf32> -> vector<8x128xf32>
    %147 = arith.addf %146, %49 : vector<8x128xf32>
    %148 = arith.mulf %147, %54 : vector<8x128xf32>
    %149 = arith.addf %128, %148 : vector<8x128xf32>
    %cst_66 = arith.constant dense<0.000000e+00> : vector<8x128xf32>
    %150 = tpu.matmul %149, %42, %cst_66 {dimension_numbers = #tpu.dot_dimension_numbers<[1], [0], [0], [1], [0, 0, 1, 1], [], []>} : vector<8x128xf32>, vector<128x128xf32>, vector<8x128xf32> -> vector<8x128xf32>
    %151 = arith.addf %150, %46 : vector<8x128xf32>
    %152 = math.tanh %151 : vector<8x128xf32>
    %cst_67 = arith.constant dense<0.000000e+00> : vector<8x128xf32>
    %153 = tpu.matmul %152, %43, %cst_67 {dimension_numbers = #tpu.dot_dimension_numbers<[1], [0], [0], [1], [0, 0, 1, 1], [], []>} : vector<8x128xf32>, vector<128x128xf32>, vector<8x128xf32> -> vector<8x128xf32>
    %154 = arith.addf %153, %49 : vector<8x128xf32>
    %cst_68 = arith.constant 2.000000e+00 : f32
    %155 = vector.broadcast %cst_68 : f32 to vector<8x128xf32>
    %156 = arith.mulf %155, %140 : vector<8x128xf32>
    %157 = arith.addf %133, %156 : vector<8x128xf32>
    %cst_69 = arith.constant 2.000000e+00 : f32
    %158 = vector.broadcast %cst_69 : f32 to vector<8x128xf32>
    %159 = arith.mulf %158, %147 : vector<8x128xf32>
    %160 = arith.addf %157, %159 : vector<8x128xf32>
    %161 = arith.addf %160, %154 : vector<8x128xf32>
    %162 = arith.mulf %58, %161 : vector<8x128xf32>
    %163 = arith.addf %128, %162 : vector<8x128xf32>
    %c0_70 = arith.constant 0 : index
    %c0_71 = arith.constant 0 : index
    %164 = vector.load %arg11[%c0_70, %c0_71] : memref<8x128xf32, #tpu.memory_space<vmem>>, vector<8x128xf32>
    tpu.vector_store %arg11[%c0_70, %c0_71], %163 {strides = array<i32>} : memref<8x128xf32, #tpu.memory_space<vmem>>, vector<8x128xf32>,
    %c0_72 = arith.constant 0 : index
    %c0_73 = arith.constant 0 : index
    %165 = vector.load %arg12[%c0_72, %c0_73] : memref<8x128xf32, #tpu.memory_space<vmem>>, vector<8x128xf32>
    tpu.vector_store %arg12[%c0_72, %c0_73], %39 {strides = array<i32>} : memref<8x128xf32, #tpu.memory_space<vmem>>, vector<8x128xf32>,
    return
  }
  func.func @transform_0(%arg0: i32) -> (i32, i32) {
    %c0_i32 = arith.constant 0 : i32
    %c0_i32_0 = arith.constant 0 : i32
    return %arg0, %c0_i32 : i32, i32
  }
  func.func @transform_1(%arg0: i32) -> (i32, i32) {
    %c0_i32 = arith.constant 0 : i32
    %c0_i32_0 = arith.constant 0 : i32
    return %arg0, %c0_i32 : i32, i32
  }
  func.func @transform_2(%arg0: i32) -> (i32, i32) {
    %c0_i32 = arith.constant 0 : i32
    %c0_i32_0 = arith.constant 0 : i32
    return %arg0, %c0_i32 : i32, i32
  }
  func.func @transform_3(%arg0: i32) -> (i32, i32) {
    %c0_i32 = arith.constant 0 : i32
    %c0_i32_0 = arith.constant 0 : i32
    return %arg0, %c0_i32 : i32, i32
  }
  func.func @transform_4(%arg0: i32) -> (i32, i32) {
    %c0_i32 = arith.constant 0 : i32
    %c0_i32_0 = arith.constant 0 : i32
    %c0_i32_1 = arith.constant 0 : i32
    return %c0_i32, %c0_i32_0 : i32, i32
  }
  func.func @transform_5(%arg0: i32) -> (i32, i32) {
    %c0_i32 = arith.constant 0 : i32
    %c0_i32_0 = arith.constant 0 : i32
    %c0_i32_1 = arith.constant 0 : i32
    return %c0_i32, %c0_i32_0 : i32, i32
  }
  func.func @transform_6(%arg0: i32) -> (i32, i32) {
    %c0_i32 = arith.constant 0 : i32
    %c0_i32_0 = arith.constant 0 : i32
    %c0_i32_1 = arith.constant 0 : i32
    return %c0_i32, %c0_i32_0 : i32, i32
  }
  func.func @transform_7(%arg0: i32) -> (i32, i32) {
    %c0_i32 = arith.constant 0 : i32
    %c0_i32_0 = arith.constant 0 : i32
    %c0_i32_1 = arith.constant 0 : i32
    return %c0_i32, %c0_i32_0 : i32, i32
  }
  func.func @transform_8(%arg0: i32) -> (i32, i32) {
    %c0_i32 = arith.constant 0 : i32
    %c0_i32_0 = arith.constant 0 : i32
    %c0_i32_1 = arith.constant 0 : i32
    return %c0_i32, %c0_i32_0 : i32, i32
  }
  func.func @transform_9(%arg0: i32) -> (i32, i32) {
    %c0_i32 = arith.constant 0 : i32
    %c0_i32_0 = arith.constant 0 : i32
    %c0_i32_1 = arith.constant 0 : i32
    return %c0_i32, %c0_i32_0 : i32, i32
  }
  func.func @transform_10(%arg0: i32) -> (i32, i32) {
    %c0_i32 = arith.constant 0 : i32
    %c0_i32_0 = arith.constant 0 : i32
    return %arg0, %c0_i32 : i32, i32
  }
  func.func @transform_11(%arg0: i32) -> (i32, i32) {
    %c0_i32 = arith.constant 0 : i32
    %c0_i32_0 = arith.constant 0 : i32
    return %arg0, %c0_i32 : i32, i32
  }
}

</mosaic_0001>

<bundles_post_ra>
// kernel: tpu_custom_call.1
= control target key start
LH: loop header
LB: loop body
LE: loop exit
PB: predicated region body
PF: predicated region fallthrough
CT: control target
= control target key end

     0   :  { %17 = vsyncpa [#allocation5], 0  ;;  %s4985_s0 = inlined_call_operand.vmem [shape: f32[8,16], index: 0, kind: input, shape index: {}]   ;;  %s4986_s1 = inlined_call_operand.hbm [shape: f32[8,32], index: 1, kind: input, shape index: {}]   ;;  %s4987_s2 = inlined_call_operand.vmem [shape: f32[8,32], index: 2, kind: input, shape index: {}]   ;;  %s4988_s3 = inlined_call_operand.vmem [shape: f32[8,1], index: 3, kind: input, shape index: {}]   ;;  %s4989_s4 = inlined_call_operand.hbm [shape: f32[128,512], index: 4, kind: input, shape index: {}]   ;;  %s4990_s5 = inlined_call_operand.vmem [shape: f32[1,512], index: 5, kind: input, shape index: {}]   ;;  %s4991_s6 = inlined_call_operand.hbm [shape: f32[128,128], index: 6, kind: input, shape index: {}]   ;;  %s4992_s7 = inlined_call_operand.vmem [shape: f32[1,128], index: 7, kind: input, shape index: {}]   ;;  %s4993_s8 = inlined_call_operand.hbm [shape: f32[128,128], index: 8, kind: input, shape index: {}]   ;;  %s4994_s9 = inlined_call_operand.vmem [shape: f32[1,128], index: 9, kind: input, shape index: {}]   ;;  %s4995_s10 = inlined_call_operand.hbm [shape: f32[8,128], index: 10, kind: output, shape index: {0}]   ;;  %s4996_s11 = inlined_call_operand.hbm [shape: f32[8,128], index: 11, kind: output, shape index: {1}]  }
   0x1   :  { %18 = vsyncpa [#allocation8], 0 }
   0x2   :  { %19 = vsyncpa [#allocation11], 0 }
   0x3   :  { %20 = vsyncpa [#allocation6], 0 }
   0x4   :  { %21 = vsyncpa [#allocation14], 0  ;;  %s4271_s17 = smov [#allocation7]   ;;  %s4129_s21 = scalar_lea.hbm %s4989_s4, 8192 }
   0x5   :  { %s43_s18 = sshll.u32 %s4271_s17, 4  ;;  %p4130_p0 = scmp.ne.s32.totalorder %s4989_s4, %s4129_s21  ;;  %s44_s18 = int_to_ptr.vmem [resolvable:$true] %s43_s18 }
   0x6   :  { %p4133_p1 = scmp.lt.u32.totalorder %s4129_s21, %s4989_s4 }
   0x8   :  { %p4135_p2 = pnand %p4133_p1, %p4130_p0 }
   0xa   :  { %4138 = shalt.err (!%p4135_p2)
}
   0xb   :  { %s4139_s26 = scalar_lea.vmem %s44_s18, 8192  ;;  %p4144_p4 = scmp.lt.s32.totalorder %s44_s18, %s44_s18 }
   0xc   :  { %p4140_p3 = scmp.ne.s32.totalorder %s44_s18, %s4139_s26  ;;  %p4145_p5 = scmp.lt.s32.totalorder %s4139_s26, %s4139_s26 }
   0xe   :  { %p4146_p6 = por %p4145_p5, %p4144_p4 }
  0x10   :  { %p4147_p7 = pnand %p4146_p6, %p4140_p3 }
  0x12   :  { %4150 = shalt.err (!%p4147_p7)
}
  0x13   :  { %s4272_s27 = smov 512   ;;  %s4273_s28 = smov 32  }
  0x14   :  { %49 = dma.hbm_to_vmem [thread:$0]  %s4989_s4, 8192, %s44_s18, [#allocation8], %s4272_s27, %s4272_s27, %s4273_s28  }
  0x15   :  { %s4274_s12 = smov [#allocation4]   ;;  %s4275_s14 = smov [#allocation9]  }
  0x16   :  { %s30_s13 = sshll.u32 %s4274_s12, 4  ;;  %s57_s15 = sshll.u32 %s4275_s14, 4  ;;  %s31_s13 = int_to_ptr.vmem [resolvable:$true] %s30_s13  ;;  %s58_s15 = int_to_ptr.vmem [resolvable:$true] %s57_s15 }
  0x17   :  { %s4151_s19 = scalar_lea.hbm %s4986_s1, 128 }
  0x18   :  { %p4152_p8 = scmp.ne.s32.totalorder %s4986_s1, %s4151_s19  ;;  %p4155_p9 = scmp.lt.u32.totalorder %s4151_s19, %s4986_s1 }
  0x1a   :  { %p4157_p10 = pnand %p4155_p9, %p4152_p8 }
  0x1c   :  { %4160 = shalt.err (!%p4157_p10)
}
  0x1d   :  { %s4161_s4 = scalar_lea.vmem %s31_s13, 128  ;;  %p4166_p12 = scmp.lt.s32.totalorder %s31_s13, %s31_s13 }
  0x1e   :  { %p4162_p11 = scmp.ne.s32.totalorder %s31_s13, %s4161_s4  ;;  %p4167_p13 = scmp.lt.s32.totalorder %s4161_s4, %s4161_s4 }
  0x20   :  { %p4168_p0 = por %p4167_p13, %p4166_p12 }
  0x22   :  { %p4169_p1 = pnand %p4168_p0, %p4162_p11 }
  0x24   :  { %4172 = shalt.err (!%p4169_p1)
}
  0x25   :  { %33 = dma.hbm_to_vmem [thread:$0]  %s4986_s1, 128, %s31_s13, [#allocation5]  }
  0x26   :  { %s4173_s27 = scalar_lea.hbm %s4991_s6, 2048 }
  0x27   :  { %p4174_p2 = scmp.ne.s32.totalorder %s4991_s6, %s4173_s27  ;;  %p4177_p3 = scmp.lt.u32.totalorder %s4173_s27, %s4991_s6 }
  0x29   :  { %p4179_p4 = pnand %p4177_p3, %p4174_p2 }
  0x2b   :  { %4182 = shalt.err (!%p4179_p4)
}
  0x2c   :  { %s4183_s14 = scalar_lea.vmem %s58_s15, 2048  ;;  %p4188_p6 = scmp.lt.s32.totalorder %s58_s15, %s58_s15 }
  0x2d   :  { %p4184_p5 = scmp.ne.s32.totalorder %s58_s15, %s4183_s14  ;;  %p4189_p7 = scmp.lt.s32.totalorder %s4183_s14, %s4183_s14 }
  0x2f   :  { %p4190_p8 = por %p4189_p7, %p4188_p6 }
  0x31   :  { %p4191_p9 = pnand %p4190_p8, %p4184_p5 }
  0x33   :  { %4194 = shalt.err (!%p4191_p9)
}
  0x34   :  { %s4276_s1 = smov 128   ;;  %s4277_s13 = smov 8  }
  0x35   :  { %63 = dma.hbm_to_vmem [thread:$0]  %s4991_s6, 2048, %s58_s15, [#allocation8], %s4276_s1, %s4276_s1, %s4277_s13  }
  0x36   :  { %s4278_s19 = smov [#allocation10]   ;;  %s4195_s23 = scalar_lea.hbm %s4993_s8, 2048 }
  0x37   :  { %s71_s20 = sshll.u32 %s4278_s19, 4  ;;  %p4196_p10 = scmp.ne.s32.totalorder %s4993_s8, %s4195_s23  ;;  %s72_s20 = int_to_ptr.vmem [resolvable:$true] %s71_s20 }
  0x38   :  { %p4199_p11 = scmp.lt.u32.totalorder %s4195_s23, %s4993_s8 }
  0x3a   :  { %p4201_p12 = pnand %p4199_p11, %p4196_p10 }
  0x3c   :  { %4204 = shalt.err (!%p4201_p12)
}
  0x3d   :  { %s4205_s26 = scalar_lea.vmem %s72_s20, 2048  ;;  %p4210_p0 = scmp.lt.s32.totalorder %s72_s20, %s72_s20 }
  0x3e   :  { %p4206_p13 = scmp.ne.s32.totalorder %s72_s20, %s4205_s26  ;;  %p4211_p1 = scmp.lt.s32.totalorder %s4205_s26, %s4205_s26 }
  0x40   :  { %p4212_p2 = por %p4211_p1, %p4210_p0 }
  0x42   :  { %p4213_p3 = pnand %p4212_p2, %p4206_p13 }
  0x44   :  { %4216 = shalt.err (!%p4213_p3)
}
  0x45   :  { %77 = dma.hbm_to_vmem [thread:$0]  %s4993_s8, 2048, %s72_s20, [#allocation11], %s4276_s1, %s4276_s1, %s4277_s13  }
  0x46   :  { %4261 = dma.done.wait [#allocation5], 128  }
  0x47   :  { %4262 = vsyncadd [#allocation5], 4294967168 }
  0x48   :  { %4263 = dma.done.wait [#allocation8], 10240  }
  0x49   :  { %4264 = vsyncadd [#allocation8], 4294957056 }
  0x4a   :  { %4265 = dma.done.wait [#allocation11], 2048  }
  0x4b   :  { %4266 = vsyncadd [#allocation11], 4294965248  ;;  %v4279_v0 = vmov 0.0   ;;  %v96_v1 = vld [vmem:[#allocation4] sm:$0xff]  ;;  %v110_v2 = vld [vmem:[#allocation7 + $0x8] sm:$0xff]  ;;  %s4280_s27 = smov 16  }
  0x4c   :  { %92 = vst [vmem:[#allocation2] sm:$0xff] %v4279_v0  ;;  %104 = vst [vmem:[#allocation3] sm:$0xff] %v4279_v0  ;;  %259 = vmatprep.mubr.f32.mxu0 %v4279_v0  ;;  %330 = vmatprep.mubr.f32.mxu1 %v4279_v0  ;;  %v114_v3 = vld [vmem:[#allocation7 + $0x28] sm:$0xff]  ;;  %v112_v5 = vld [vmem:[#allocation7 + $0x18] sm:$0xff]  ;;  %vm94_vm0 = vcmask 130048   ;;  %vm101_vm1 = vcmask 392320  }
  0x4d   :  { %98 = vrot.lane.b32.xlu0 %v96_v1, %s4280_s27  ;;  %v3433_v4 = vpack.c.bf16 %v114_v3, %v110_v2  ;;  %v116_v6 = vld [vmem:[#allocation7 + $0x38] sm:$0xff]  ;;  %v109_v7 = vld [vmem:[#allocation7] sm:$0xff]  ;;  %v111_v10 = vld [vmem:[#allocation7 + $0x10] sm:$0xff]  ;;  %vm106_vm2 = vcmask 261120   ;;  %vm4282_vm3 = vmmov 0  }
  0x4e   :  { %v3465_v8 = vpack.c.bf16 %v116_v6, %v112_v5  ;;  %v113_v9 = vld [vmem:[#allocation7 + $0x20] sm:$0xff]  ;;  %v115_v11 = vld [vmem:[#allocation7 + $0x30] sm:$0xff]  ;;  %v118_v14 = vld [vmem:[#allocation7 + $0x48] sm:$0xff] }
  0x4f   :  { %3434 = vmatprep.subr.bf16.mxu0 %v3433_v4  ;;  %v3435_v12 = vpack.c.bf16 %v113_v9, %v109_v7  ;;  %v3467_v13 = vpack.c.bf16 %v115_v11, %v111_v10  ;;  %v122_v15 = vld [vmem:[#allocation7 + $0x68] sm:$0xff]  ;;  %v120_v16 = vld [vmem:[#allocation7 + $0x58] sm:$0xff]  ;;  %v117_v19 = vld [vmem:[#allocation7 + $0x40] sm:$0xff] }
  0x50   :  { %3466 = vmatprep.subr.bf16.mxu1 %v3465_v8  ;;  %v3437_v17 = vpack.c.bf16 %v122_v15, %v118_v14  ;;  %v124_v18 = vld [vmem:[#allocation7 + $0x78] sm:$0xff]  ;;  %v121_v20 = vld [vmem:[#allocation7 + $0x60] sm:$0xff]  ;;  %v119_v23 = vld [vmem:[#allocation7 + $0x50] sm:$0xff] }
  0x51   :  { %3436 = vmatpush1.bf16.msra.mxu0 %v3435_v12  ;;  %3468 = vmatpush1.bf16.msra.mxu1 %v3467_v13  ;;  %v3469_v21 = vpack.c.bf16 %v124_v18, %v120_v16  ;;  %v3439_v22 = vpack.c.bf16 %v121_v20, %v117_v19  ;;  %v123_v24 = vld [vmem:[#allocation7 + $0x70] sm:$0xff]  ;;  %v126_v25 = vld [vmem:[#allocation7 + $0x88] sm:$0xff]  ;;  %v128_v28 = vld [vmem:[#allocation7 + $0x98] sm:$0xff] }
  0x52   :  { %3438 = vmatprep.subr.bf16.mxu0 %v3437_v17  ;;  %v3471_v26 = vpack.c.bf16 %v123_v24, %v119_v23  ;;  %v130_v27 = vld [vmem:[#allocation7 + $0xa8] sm:$0xff]  ;;  %v132_v29 = vld [vmem:[#allocation7 + $0xb8] sm:$0xff]  ;;  %v125_v32 = vld [vmem:[#allocation7 + $0x80] sm:$0xff] }
  0x53   :  { %3470 = vmatprep.subr.bf16.mxu1 %v3469_v21  ;;  %v3441_v30 = vpack.c.bf16 %v130_v27, %v126_v25  ;;  %v3473_v31 = vpack.c.bf16 %v132_v29, %v128_v28  ;;  %v129_v33 = vld [vmem:[#allocation7 + $0xa0] sm:$0xff]  ;;  %v127_v34 = vld [vmem:[#allocation7 + $0x90] sm:$0xff]  ;;  %v134_v36 = vld [vmem:[#allocation7 + $0xc8] sm:$0xff] }
  0x54   :  { %v131_v35 = vld [vmem:[#allocation7 + $0xb0] sm:$0xff]  ;;  %v138_v37 = vld [vmem:[#allocation7 + $0xe8] sm:$0xff]  ;;  %v3443_v38 = vpack.c.bf16 %v129_v33, %v125_v32  ;;  %v136_v40 = vld [vmem:[#allocation7 + $0xd8] sm:$0xff] }
  0x55   :  { %3440 = vmatpush1.bf16.msra.mxu0 %v3439_v22  ;;  %3472 = vmatpush1.bf16.msra.mxu1 %v3471_v26  ;;  %v3475_v39 = vpack.c.bf16 %v131_v35, %v127_v34  ;;  %v140_v41 = vld [vmem:[#allocation7 + $0xf8] sm:$0xff]  ;;  %v133_v42 = vld [vmem:[#allocation7 + $0xc0] sm:$0xff]  ;;  %v3445_v43 = vpack.c.bf16 %v138_v37, %v134_v36  ;;  %v135_v46 = vld [vmem:[#allocation7 + $0xd0] sm:$0xff] }
  0x56   :  { %3442 = vmatprep.subr.bf16.mxu0 %v3441_v30  ;;  %3474 = vmatprep.subr.bf16.mxu1 %v3473_v31  ;;  %v3477_v44 = vpack.c.bf16 %v140_v41, %v136_v40  ;;  %v137_v45 = vld [vmem:[#allocation7 + $0xe0] sm:$0xff]  ;;  %v139_v47 = vld [vmem:[#allocation7 + $0xf0] sm:$0xff]  ;;  %v142_v48 = vld [vmem:[#allocation7 + $0x108] sm:$0xff]  ;;  %v4281_v41 = vmov 0.0|0.0  }
  0x57   :  { %v146_v49 = vld [vmem:[#allocation7 + $0x128] sm:$0xff]  ;;  %v144_v50 = vld [vmem:[#allocation7 + $0x118] sm:$0xff]  ;;  %v3447_v52 = vpack.c.bf16 %v137_v45, %v133_v42  ;;  %v3479_v53 = vpack.c.bf16 %v139_v47, %v135_v46  ;;  %v141_v54 = vld [vmem:[#allocation7 + $0x100] sm:$0xff] }
  0x58   :  { %v148_v51 = vld [vmem:[#allocation7 + $0x138] sm:$0xff]  ;;  %v145_v55 = vld [vmem:[#allocation7 + $0x120] sm:$0xff]  ;;  %v3449_v56 = vpack.c.bf16 %v146_v49, %v142_v48  ;;  %v143_v58 = vld [vmem:[#allocation7 + $0x110] sm:$0xff] }
  0x59   :  { %3444 = vmatpush1.bf16.msra.mxu0 %v3443_v38  ;;  %3476 = vmatpush1.bf16.msra.mxu1 %v3475_v39  ;;  %v3481_v57 = vpack.c.bf16 %v148_v51, %v144_v50  ;;  %v147_v59 = vld [vmem:[#allocation7 + $0x130] sm:$0xff]  ;;  %v150_v60 = vld [vmem:[#allocation7 + $0x148] sm:$0xff]  ;;  %v152_v62 = vld [vmem:[#allocation7 + $0x158] sm:$0xff]  ;;  %v3451_v2 = vpack.c.bf16 %v145_v55, %v141_v54 }
  0x5a   :  { %3446 = vmatprep.subr.bf16.mxu0 %v3445_v43  ;;  %3478 = vmatprep.subr.bf16.mxu1 %v3477_v44  ;;  %v154_v61 = vld [vmem:[#allocation7 + $0x168] sm:$0xff]  ;;  %v156_v63 = vld [vmem:[#allocation7 + $0x178] sm:$0xff]  ;;  %v3483_v3 = vpack.c.bf16 %v147_v59, %v143_v58  ;;  %v149_v4 = vld [vmem:[#allocation7 + $0x140] sm:$0xff] }
  0x5b   :  { %v93_v1 = vld [vmem:[%s4985_s0] sm:$0xff]  ;;  %v153_v5 = vld [vmem:[#allocation7 + $0x160] sm:$0xff]  ;;  %v3453_v6 = vpack.c.bf16 %v154_v61, %v150_v60  ;;  %v3485_v7 = vpack.c.bf16 %v156_v63, %v152_v62  ;;  %v151_v8 = vld [vmem:[#allocation7 + $0x150] sm:$0xff] }
  0x5c   :  { %95 = vst.msk [vmem:[#allocation2] sm:$0xff] %vm94_vm0, %v93_v1  ;;  %v155_v9 = vld [vmem:[#allocation7 + $0x170] sm:$0xff]  ;;  %v158_v10 = vld [vmem:[#allocation7 + $0x188] sm:$0xff]  ;;  %v160_v12 = vld [vmem:[#allocation7 + $0x198] sm:$0xff]  ;;  %v3455_v14 = vpack.c.bf16 %v153_v5, %v149_v4 }
  0x5d   :  { %3448 = vmatpush1.bf16.msra.mxu0 %v3447_v52  ;;  %3480 = vmatpush1.bf16.msra.mxu1 %v3479_v53  ;;  %v162_v11 = vld [vmem:[#allocation7 + $0x1a8] sm:$0xff]  ;;  %v164_v13 = vld [vmem:[#allocation7 + $0x1b8] sm:$0xff]  ;;  %v3487_v15 = vpack.c.bf16 %v155_v9, %v151_v8  ;;  %v157_v16 = vld [vmem:[#allocation7 + $0x180] sm:$0xff] }
  0x5e   :  { %3450 = vmatprep.subr.bf16.mxu0 %v3449_v56  ;;  %3482 = vmatprep.subr.bf16.mxu1 %v3481_v57  ;;  %v161_v17 = vld [vmem:[#allocation7 + $0x1a0] sm:$0xff]  ;;  %v3457_v18 = vpack.c.bf16 %v162_v11, %v158_v10  ;;  %v3489_v19 = vpack.c.bf16 %v164_v13, %v160_v12  ;;  %v159_v20 = vld [vmem:[#allocation7 + $0x190] sm:$0xff]  ;;  %v166_v22 = vld [vmem:[#allocation7 + $0x1c8] sm:$0xff] }
  0x5f   :  { %v163_v21 = vld [vmem:[#allocation7 + $0x1b0] sm:$0xff]  ;;  %v170_v23 = vld [vmem:[#allocation7 + $0x1e8] sm:$0xff]  ;;  %v168_v24 = vld [vmem:[#allocation7 + $0x1d8] sm:$0xff]  ;;  %v3459_v26 = vpack.c.bf16 %v161_v17, %v157_v16  ;;  %v175_v16 = vlaneseq }
  0x60   :  { %v172_v25 = vld [vmem:[#allocation7 + $0x1f8] sm:$0xff]  ;;  %v3491_v27 = vpack.c.bf16 %v163_v21, %v159_v20  ;;  %v165_v28 = vld [vmem:[#allocation7 + $0x1c0] sm:$0xff]  ;;  %v3461_v29 = vpack.c.bf16 %v170_v23, %v166_v22  ;;  %v167_v32 = vld [vmem:[#allocation7 + $0x1d0] sm:$0xff] }
  0x61   :  { %3452 = vmatpush1.bf16.msra.mxu0 %v3451_v2  ;;  %3484 = vmatpush1.bf16.msra.mxu1 %v3483_v3  ;;  %v3493_v30 = vpack.c.bf16 %v172_v25, %v168_v24  ;;  %v169_v31 = vld [vmem:[#allocation7 + $0x1e0] sm:$0xff]  ;;  %v171_v33 = vld [vmem:[#allocation7 + $0x1f0] sm:$0xff]  ;;  %v362_v39 = vld [vmem:[#allocation9 + $0x8] sm:$0xff]  ;;  %v176_v17 = vshrl.u32 %v175_v16, 7 }
  0x62   :  { %3454 = vmatprep.subr.bf16.mxu0 %v3453_v6  ;;  %3486 = vmatprep.subr.bf16.mxu1 %v3485_v7  ;;  %v3463_v34 = vpack.c.bf16 %v169_v31, %v165_v28  ;;  %v3495_v35 = vpack.c.bf16 %v171_v33, %v167_v32  ;;  %v361_v38 = vld [vmem:[#allocation9] sm:$0xff]  ;;  %v363_v42 = vld [vmem:[#allocation9 + $0x10] sm:$0xff]  ;;  %v364_v43 = vld [vmem:[#allocation9 + $0x18] sm:$0xff] }
  0x63   :  { %v4401_v40 = vpack.c.bf16 %v362_v39, %v361_v38  ;;  %v4407_v44 = vpack.c.bf16 %v364_v43, %v363_v42  ;;  %v105_v45 = vld [vmem:[%s4987_s2] sm:$0xff]  ;;  %v365_v46 = vld [vmem:[#allocation9 + $0x20] sm:$0xff]  ;;  %v367_v49 = vld [vmem:[#allocation9 + $0x30] sm:$0xff]  ;;  %v181_v20 = vsub.s32 1, %v176_v17  ;;  %v189_v25 = vsub.s32 3, %v176_v17 }
  0x64   :  { %107 = vst.msk [vmem:[#allocation3] sm:$0xff] %vm106_vm2, %v105_v45  ;;  %v366_v47 = vld [vmem:[#allocation9 + $0x28] sm:$0xff]  ;;  %v368_v50 = vld [vmem:[#allocation9 + $0x38] sm:$0xff]  ;;  %v369_v52 = vld [vmem:[#allocation9 + $0x40] sm:$0xff]  ;;  %v185_v33 = vsub.s32 2, %v176_v17 }
  0x65   :  { %3456 = vmatpush1.bf16.msra.mxu0 %v3455_v14  ;;  %3488 = vmatpush1.bf16.msra.mxu1 %v3487_v15  ;;  %v4414_v48 = vpack.c.bf16 %v366_v47, %v365_v46  ;;  %v4418_v51 = vpack.c.bf16 %v368_v50, %v367_v49  ;;  %v370_v53 = vld [vmem:[#allocation9 + $0x48] sm:$0xff]  ;;  %v371_v55 = vld [vmem:[#allocation9 + $0x50] sm:$0xff]  ;;  %v372_v56 = vld [vmem:[#allocation9 + $0x58] sm:$0xff] }
  0x66   :  { %3458 = vmatprep.subr.bf16.mxu0 %v3457_v18  ;;  %3490 = vmatprep.subr.bf16.mxu1 %v3489_v19  ;;  %v4422_v54 = vpack.c.bf16 %v370_v53, %v369_v52  ;;  %v373_v57 = vld [vmem:[#allocation9 + $0x60] sm:$0xff]  ;;  %v4426_v58 = vpack.c.bf16 %v372_v56, %v371_v55  ;;  %v374_v59 = vld [vmem:[#allocation9 + $0x68] sm:$0xff]  ;;  %v375_v61 = vld [vmem:[#allocation9 + $0x70] sm:$0xff]  ;;  %v177_v18 = vsub.s32 0, %v176_v17 }
  0x67   :  { %v4433_v60 = vpack.c.bf16 %v374_v59, %v373_v57  ;;  %v376_v62 = vld [vmem:[#allocation9 + $0x78] sm:$0xff]  ;;  %v377_v1 = vld [vmem:[#allocation10] sm:$0xff]  ;;  %v378_v2 = vld [vmem:[#allocation10 + $0x8] sm:$0xff] }
  0x68   :  { %v4437_v63 = vpack.c.bf16 %v376_v62, %v375_v61  ;;  %v379_v3 = vld [vmem:[#allocation10 + $0x10] sm:$0xff]  ;;  %v4442_v4 = vpack.c.bf16 %v378_v2, %v377_v1  ;;  %v380_v5 = vld [vmem:[#allocation10 + $0x18] sm:$0xff]  ;;  %v381_v7 = vld [vmem:[#allocation10 + $0x20] sm:$0xff] }
  0x69   :  { %3460 = vmatpush1.bf16.msra.mxu0 %v3459_v26  ;;  %3492 = vmatpush1.bf16.msra.mxu1 %v3491_v27  ;;  %v4445_v6 = vpack.c.bf16 %v380_v5, %v379_v3  ;;  %v382_v8 = vld [vmem:[#allocation10 + $0x28] sm:$0xff]  ;;  %v383_v10 = vld [vmem:[#allocation10 + $0x30] sm:$0xff]  ;;  %v384_v11 = vld [vmem:[#allocation10 + $0x38] sm:$0xff] }
  0x6a   :  { %3462 = vmatprep.subr.bf16.mxu0 %v3461_v29  ;;  %3494 = vmatprep.subr.bf16.mxu1 %v3493_v30  ;;  %v4449_v9 = vpack.c.bf16 %v382_v8, %v381_v7  ;;  %v4453_v12 = vpack.c.bf16 %v384_v11, %v383_v10  ;;  %v385_v13 = vld [vmem:[#allocation10 + $0x40] sm:$0xff]  ;;  %v386_v14 = vld [vmem:[#allocation10 + $0x48] sm:$0xff]  ;;  %v387_v62 = vld [vmem:[#allocation10 + $0x50] sm:$0xff] }
  0x6b   :  { %v4457_v15 = vpack.c.bf16 %v386_v14, %v385_v13  ;;  %v173_v19 = vld [vmem:[%s4990_s5] sm:$0xf]  ;;  %v108_v47 = vld [vmem:[#allocation3] sm:$0xff]  ;;  %v388_v1 = vld [vmem:[#allocation10 + $0x58] sm:$0xff]  ;;  %v4283_v14 = vmov 0  }
  0x6c   :  { %v178_v21 = vrot.slane %v173_v19, %v177_v18  ;;  %v182_v22 = vrot.slane %v173_v19, %v181_v20  ;;  %v190_v32 = vrot.slane %v173_v19, %v189_v25  ;;  %v4486_v2 = vpack.c.bf16 %v388_v1, %v387_v62  ;;  %v389_v3 = vld [vmem:[#allocation10 + $0x60] sm:$0xff]  ;;  %v390_v5 = vld [vmem:[#allocation10 + $0x68] sm:$0xff]  ;;  %v391_v8 = vld [vmem:[#allocation10 + $0x70] sm:$0xff]  ;;  %4088 = vset.pattern.permute.xlu0 %v4283_v14 }
  0x6d   :  { %3464 = vmatpush1.bf16.msra.mxu0 %v3463_v34  ;;  %3496 = vmatpush1.bf16.msra.mxu1 %v3495_v35  ;;  %v186_v35 = vrot.slane %v173_v19, %v185_v33  ;;  %v4489_v7 = vpack.c.bf16 %v390_v5, %v389_v3  ;;  %v392_v10 = vld [vmem:[#allocation10 + $0x78] sm:$0xff]  ;;  %v407_v13 = vld [vmem:[%s4988_s3] sm:$0xff] }
  0x6e   :  { %3497 = vmatprep.subr.bf16.mxu0 %v4281_v41  ;;  %3521 = vmatprep.subr.bf16.mxu1 %v4281_v41  ;;  %v4493_v11 = vpack.c.bf16 %v392_v10, %v391_v8  ;;  %v408_v16 = vmul.f32 0.33333334, %v407_v13  ;;  %v4504_v17 = vld [vmem:[%s4992_s7] ss:$0 sm:$0xff] }
  0x70   :  { %411 = vperm.xlu0 %4088, %v408_v16  }
  0xbf   :  { %v99_v36 = vpop.permute.xlu0 %98 }
  0xc0   :  { %102 = vst.msk [vmem:[#allocation2] sm:$0xff] %vm101_vm1, %v99_v36 }
  0xc7   :  { %v103_v37 = vld [vmem:[#allocation2] sm:$0xff] }
  0xc8   :  { %260 = vmatmul.mubr.f32.vlgmr.msra.gmra.mrb[0].mxu0 %v103_v37  ;;  %331 = vmatmul.mubr.f32.vlgmr.msra.gmra.mrb[0].mxu1 %v103_v37 }
  0xc9   :  { %3499 = vmatpush3.bf16.msra.mxu0 %v4401_v40  ;;  %2625 = vmatprep.mubr.msk.f32.mxu0 %vm4282_vm3, %v4279_v0 }
  0xca   :  { %3500 = vmatprep.subr.bf16.mxu0 %v4281_v41  ;;  %2660 = vmatprep.mubr.msk.f32.mxu1 %vm4282_vm3, %v4279_v0 }
  0xcb   :  { %3523 = vmatpush3.bf16.msra.mxu1 %v4442_v4 }
  0xcc   :  { %3524 = vmatprep.subr.bf16.mxu1 %v4281_v41 }
  0xcd   :  { %3502 = vmatpush3.bf16.msra.mxu0 %v4407_v44 }
  0xce   :  { %3503 = vmatprep.subr.bf16.mxu0 %v4281_v41 }
  0xcf   :  { %3526 = vmatpush3.bf16.msra.mxu1 %v4445_v6 }
  0xd0   :  { %3527 = vmatprep.subr.bf16.mxu1 %v4281_v41 }
  0xd1   :  { %3505 = vmatpush3.bf16.msra.mxu0 %v4414_v48 }
  0xd2   :  { %3506 = vmatprep.subr.bf16.mxu0 %v4281_v41 }
  0xd3   :  { %3529 = vmatpush3.bf16.msra.mxu1 %v4449_v9 }
  0xd4   :  { %3530 = vmatprep.subr.bf16.mxu1 %v4281_v41 }
  0xd5   :  { %3508 = vmatpush3.bf16.msra.mxu0 %v4418_v51 }
  0xd6   :  { %3509 = vmatprep.subr.bf16.mxu0 %v4281_v41 }
  0xd7   :  { %3532 = vmatpush3.bf16.msra.mxu1 %v4453_v12 }
  0xd8   :  { %3533 = vmatprep.subr.bf16.mxu1 %v4281_v41 }
  0xd9   :  { %3511 = vmatpush3.bf16.msra.mxu0 %v4422_v54 }
  0xda   :  { %3512 = vmatprep.subr.bf16.mxu0 %v4281_v41 }
  0xdb   :  { %3535 = vmatpush3.bf16.msra.mxu1 %v4457_v15 }
  0xdc   :  { %3536 = vmatprep.subr.bf16.mxu1 %v4281_v41 }
  0xdd   :  { %3514 = vmatpush3.bf16.msra.mxu0 %v4426_v58 }
  0xde   :  { %3515 = vmatprep.subr.bf16.mxu0 %v4281_v41 }
  0xdf   :  { %3538 = vmatpush3.bf16.msra.mxu1 %v4486_v2 }
  0xe0   :  { %3539 = vmatprep.subr.bf16.mxu1 %v4281_v41 }
  0xe1   :  { %3517 = vmatpush3.bf16.msra.mxu0 %v4433_v60 }
  0xe2   :  { %3518 = vmatprep.subr.bf16.mxu0 %v4281_v41 }
  0xe3   :  { %3541 = vmatpush3.bf16.msra.mxu1 %v4489_v7 }
  0xe4   :  { %3542 = vmatprep.subr.bf16.mxu1 %v4281_v41 }
  0xe5   :  { %3520 = vmatpush3.bf16.msra.mxu0 %v4437_v63 }
  0xe6   :  { %3545 = vmatprep.subr.bf16.mxu0 %v4281_v41 }
  0xe7   :  { %3544 = vmatpush3.bf16.msra.mxu1 %v4493_v11 }
  0xe8   :  { %3569 = vmatprep.subr.bf16.mxu1 %v4281_v41 }
 0x19b   :  { %v261_v23 = vpop.f32.mrb[0].mxu0  ;;  %v332_v24 = vpop.f32.mrb[0].mxu1 }
 0x19c   :  { %v262_v26 = vadd.f32 %v261_v23, %v178_v21  ;;  %v263_v27 = vpop.f32.mrb[1].mxu0  ;;  %v334_v28 = vpop.f32.mrb[1].mxu1  ;;  %v333_v37 = vadd.f32 %v332_v24, %v186_v35  ;;  %v4530_v23 = vld [vmem:[%s4994_s9] ss:$0 sm:$0xff]  ;;  %s4284_s9 = smov [#allocation13]  }
 0x19d   :  { %v264_v29 = vadd.f32 %v263_v27, %v182_v22  ;;  %v335_v34 = vadd.f32 %v334_v28, %v190_v32  ;;  %v4525_v22 = vpop.permute.xlu0 %411  ;;  %s2165_s13 = sshll.u32 %s4284_s9, 4  ;;  %s2166_s13 = int_to_ptr.vmem [resolvable:$true] %s2165_s13 }
 0x19e   :  { %v2180_v30 = vmul.f32 -1.442695, %v262_v26  ;;  %v4533_v24 = vmul.f32 0.5, %v4525_v22  ;;  %v4661_v13 = vmul.f32 0.16666667, %v4525_v22  ;;  %s4217_s16 = scalar_lea.vmem %s2166_s13, 128  ;;  %p4222_p5 = scmp.lt.s32.totalorder %s2166_s13, %s2166_s13 }
 0x19f   :  { %v2181_v31 = vmul.f32 -1.442695, %v264_v29  ;;  %v2182_v36 = vmul.f32 -1.442695, %v335_v34  ;;  %p4218_p4 = scmp.ne.s32.totalorder %s2166_s13, %s4217_s16  ;;  %p4223_p6 = scmp.lt.s32.totalorder %s4217_s16, %s4217_s16 }
 0x1a0   :  { %4089 = vpow2.f32 %v2180_v30 }
 0x1a1   :  { %4091 = vpow2.f32 %v2181_v31  ;;  %p4224_p7 = por %p4223_p6, %p4222_p5 }
 0x1a2   :  { %4093 = vpow2.f32 %v2182_v36 }
 0x1a3   :  { %4095 = vtanh.f32 %v333_v37  ;;  %p4225_p8 = pnand %p4224_p7, %p4218_p4 }
 0x1aa   :  { %v4090_v38 = vpop.eup %4089 }
 0x1ab   :  { %v4092_v39 = vpop.eup %4091  ;;  %v340_v42 = vadd.f32 1.0, %v4090_v38 }
 0x1ac   :  { %v346_v43 = vadd.f32 1.0, %v4092_v39  ;;  %v4094_v45 = vpop.eup %4093 }
 0x1ad   :  { %4097 = vrcp.f32 %v340_v42  ;;  %v4096_v46 = vpop.eup %4095  ;;  %v353_v53 = vadd.f32 1.0, %v4094_v45 }
 0x1ae   :  { %4099 = vrcp.f32 %v346_v43 }
 0x1af   :  { %4101 = vrcp.f32 %v353_v53 }
 0x1b7   :  { %v4098_v49 = vpop.eup %4097 }
 0x1b8   :  { %v4100_v50 = vpop.eup %4099  ;;  %v357_v52 = vmul.f32 %v4098_v49, %v4096_v46 }
 0x1b9   :  { %v356_v55 = vmul.f32 %v4100_v50, %v108_v47  ;;  %v4102_v57 = vpop.eup %4101 }
 0x1bb   :  { %v358_v56 = vadd.f32 %v357_v52, %v356_v55 }
 0x1bd   :  { %4103 = vtanh.f32 %v358_v56  ;;  %2148 = vst [vmem:[#allocation13] sm:$0xff] %v358_v56 }
 0x1c7   :  { %v4104_v59 = vpop.eup %4103 }
 0x1c8   :  { %v4465_v61 = vmul.f32 %v4104_v59, %v4102_v57 }
 0x1ca   :  { %2626 = vmatmul.mubr.f32.vlgmr.msra.gmra.mrb[2].mxu0 %v4465_v61 }
 0x1cb   :  { %3547 = vmatpush3.bf16.msra.mxu0 %v4401_v40  ;;  %2695 = vmatprep.mubr.msk.f32.mxu0 %vm4282_vm3, %v4279_v0 }
 0x1cc   :  { %3548 = vmatprep.subr.bf16.mxu0 %v4281_v41 }
 0x1cf   :  { %3550 = vmatpush3.bf16.msra.mxu0 %v4407_v44 }
 0x1d0   :  { %3551 = vmatprep.subr.bf16.mxu0 %v4281_v41 }
 0x1d3   :  { %3553 = vmatpush3.bf16.msra.mxu0 %v4414_v48 }
 0x1d4   :  { %3554 = vmatprep.subr.bf16.mxu0 %v4281_v41 }
 0x1d7   :  { %3556 = vmatpush3.bf16.msra.mxu0 %v4418_v51 }
 0x1d8   :  { %3557 = vmatprep.subr.bf16.mxu0 %v4281_v41 }
 0x1db   :  { %3559 = vmatpush3.bf16.msra.mxu0 %v4422_v54 }
 0x1dc   :  { %3560 = vmatprep.subr.bf16.mxu0 %v4281_v41 }
 0x1df   :  { %3562 = vmatpush3.bf16.msra.mxu0 %v4426_v58 }
 0x1e0   :  { %3563 = vmatprep.subr.bf16.mxu0 %v4281_v41 }
 0x1e3   :  { %3565 = vmatpush3.bf16.msra.mxu0 %v4433_v60 }
 0x1e4   :  { %3566 = vmatprep.subr.bf16.mxu0 %v4281_v41 }
 0x1e7   :  { %3568 = vmatpush3.bf16.msra.mxu0 %v4437_v63 }
 0x1e8   :  { %3593 = vmatprep.subr.bf16.mxu0 %v4281_v41 }
 0x29d   :  { %v482_v18 = vpop.f32.mrb[2].mxu0 }
 0x29e   :  { %v483_v19 = vadd.f32 %v4504_v17, %v482_v18  ;;  %v2627_v20 = vpop.f32.mrb[3].mxu0 }
 0x2a0   :  { %4105 = vtanh.f32 %v483_v19 }
 0x2aa   :  { %v4106_v21 = vpop.eup %4105 }
 0x2ab   :  { %2661 = vmatmul.mubr.f32.vlgmr.msra.gmra.mrb[2].mxu1 %v4106_v21 }
 0x2ac   :  { %3571 = vmatpush3.bf16.msra.mxu1 %v4442_v4  ;;  %2730 = vmatprep.mubr.msk.f32.mxu1 %vm4282_vm3, %v4279_v0 }
 0x2ad   :  { %3572 = vmatprep.subr.bf16.mxu1 %v4281_v41 }
 0x2b0   :  { %3574 = vmatpush3.bf16.msra.mxu1 %v4445_v6 }
 0x2b1   :  { %3575 = vmatprep.subr.bf16.mxu1 %v4281_v41 }
 0x2b4   :  { %3577 = vmatpush3.bf16.msra.mxu1 %v4449_v9 }
 0x2b5   :  { %3578 = vmatprep.subr.bf16.mxu1 %v4281_v41 }
 0x2b8   :  { %3580 = vmatpush3.bf16.msra.mxu1 %v4453_v12 }
 0x2b9   :  { %3581 = vmatprep.subr.bf16.mxu1 %v4281_v41 }
 0x2bc   :  { %3583 = vmatpush3.bf16.msra.mxu1 %v4457_v15 }
 0x2bd   :  { %3584 = vmatprep.subr.bf16.mxu1 %v4281_v41 }
 0x2c0   :  { %3586 = vmatpush3.bf16.msra.mxu1 %v4486_v2 }
 0x2c1   :  { %3587 = vmatprep.subr.bf16.mxu1 %v4281_v41 }
 0x2c4   :  { %3589 = vmatpush3.bf16.msra.mxu1 %v4489_v7 }
 0x2c5   :  { %3590 = vmatprep.subr.bf16.mxu1 %v4281_v41 }
 0x2c8   :  { %3592 = vmatpush3.bf16.msra.mxu1 %v4493_v11 }
 0x2c9   :  { %3617 = vmatprep.subr.bf16.mxu1 %v4281_v41 }
 0x37e   :  { %v553_v25 = vpop.f32.mrb[2].mxu1 }
 0x37f   :  { %v4536_v26 = vadd.f32 %v4530_v23, %v553_v25  ;;  %v2662_v27 = vpop.f32.mrb[3].mxu1 }
 0x381   :  { %v557_v28 = vmul.f32 %v4536_v26, %v4533_v24 }
 0x383   :  { %v558_v29 = vadd.f32 %v557_v28, %v4465_v61 }
 0x385   :  { %2696 = vmatmul.mubr.f32.vlgmr.msra.gmra.mrb[4].mxu0 %v558_v29 }
 0x386   :  { %3595 = vmatpush3.bf16.msra.mxu0 %v4401_v40  ;;  %2765 = vmatprep.mubr.msk.f32.mxu0 %vm4282_vm3, %v4279_v0 }
 0x387   :  { %3596 = vmatprep.subr.bf16.mxu0 %v4281_v41 }
 0x38a   :  { %3598 = vmatpush3.bf16.msra.mxu0 %v4407_v44 }
 0x38b   :  { %3599 = vmatprep.subr.bf16.mxu0 %v4281_v41 }
 0x38e   :  { %3601 = vmatpush3.bf16.msra.mxu0 %v4414_v48 }
 0x38f   :  { %3602 = vmatprep.subr.bf16.mxu0 %v4281_v41 }
 0x392   :  { %3604 = vmatpush3.bf16.msra.mxu0 %v4418_v51 }
 0x393   :  { %3605 = vmatprep.subr.bf16.mxu0 %v4281_v41 }
 0x396   :  { %3607 = vmatpush3.bf16.msra.mxu0 %v4422_v54 }
 0x397   :  { %3608 = vmatprep.subr.bf16.mxu0 %v4281_v41 }
 0x39a   :  { %3610 = vmatpush3.bf16.msra.mxu0 %v4426_v58 }
 0x39b   :  { %3611 = vmatprep.subr.bf16.mxu0 %v4281_v41 }
 0x39e   :  { %3613 = vmatpush3.bf16.msra.mxu0 %v4433_v60 }
 0x39f   :  { %3614 = vmatprep.subr.bf16.mxu0 %v4281_v41 }
 0x3a2   :  { %3616 = vmatpush3.bf16.msra.mxu0 %v4437_v63 }
 0x3a3   :  { %3641 = vmatprep.subr.bf16.mxu0 %v4281_v41 }
 0x458   :  { %v625_v30 = vpop.f32.mrb[4].mxu0 }
 0x459   :  { %v626_v31 = vadd.f32 %v4504_v17, %v625_v30  ;;  %v2697_v32 = vpop.f32.mrb[5].mxu0 }
 0x45b   :  { %4107 = vtanh.f32 %v626_v31 }
 0x465   :  { %v4108_v33 = vpop.eup %4107 }
 0x466   :  { %2731 = vmatmul.mubr.f32.vlgmr.msra.gmra.mrb[4].mxu1 %v4108_v33 }
 0x467   :  { %3619 = vmatpush3.bf16.msra.mxu1 %v4442_v4  ;;  %2800 = vmatprep.mubr.msk.f32.mxu1 %vm4282_vm3, %v4279_v0 }
 0x468   :  { %3620 = vmatprep.subr.bf16.mxu1 %v4281_v41 }
 0x46b   :  { %3622 = vmatpush3.bf16.msra.mxu1 %v4445_v6 }
 0x46c   :  { %3623 = vmatprep.subr.bf16.mxu1 %v4281_v41 }
 0x46f   :  { %3625 = vmatpush3.bf16.msra.mxu1 %v4449_v9 }
 0x470   :  { %3626 = vmatprep.subr.bf16.mxu1 %v4281_v41 }
 0x473   :  { %3628 = vmatpush3.bf16.msra.mxu1 %v4453_v12 }
 0x474   :  { %3629 = vmatprep.subr.bf16.mxu1 %v4281_v41 }
 0x477   :  { %3631 = vmatpush3.bf16.msra.mxu1 %v4457_v15 }
 0x478   :  { %3632 = vmatprep.subr.bf16.mxu1 %v4281_v41 }
 0x47b   :  { %3634 = vmatpush3.bf16.msra.mxu1 %v4486_v2 }
 0x47c   :  { %3635 = vmatprep.subr.bf16.mxu1 %v4281_v41 }
 0x47f   :  { %3637 = vmatpush3.bf16.msra.mxu1 %v4489_v7 }
 0x480   :  { %3638 = vmatprep.subr.bf16.mxu1 %v4281_v41 }
 0x483   :  { %3640 = vmatpush3.bf16.msra.mxu1 %v4493_v11 }
 0x484   :  { %3665 = vmatprep.subr.bf16.mxu1 %v4281_v41 }
 0x539   :  { %v696_v34 = vpop.f32.mrb[4].mxu1 }
 0x53a   :  { %v697_v35 = vadd.f32 %v4530_v23, %v696_v34  ;;  %v2732_v36 = vpop.f32.mrb[5].mxu1 }
 0x53c   :  { %v700_v37 = vmul.f32 %v697_v35, %v4533_v24  ;;  %v986_v46 = vmul.f32 2.0, %v697_v35 }
 0x53e   :  { %v701_v38 = vadd.f32 %v700_v37, %v4465_v61  ;;  %v987_v52 = vadd.f32 %v986_v46, %v4536_v26 }
 0x540   :  { %2766 = vmatmul.mubr.f32.vlgmr.msra.gmra.mrb[6].mxu0 %v701_v38 }
 0x541   :  { %3643 = vmatpush3.bf16.msra.mxu0 %v4401_v40  ;;  %2835 = vmatprep.mubr.msk.f32.mxu0 %vm4282_vm3, %v4279_v0 }
 0x542   :  { %3644 = vmatprep.subr.bf16.mxu0 %v4281_v41 }
 0x545   :  { %3646 = vmatpush3.bf16.msra.mxu0 %v4407_v44 }
 0x546   :  { %3647 = vmatprep.subr.bf16.mxu0 %v4281_v41 }
 0x549   :  { %3649 = vmatpush3.bf16.msra.mxu0 %v4414_v48 }
 0x54a   :  { %3650 = vmatprep.subr.bf16.mxu0 %v4281_v41 }
 0x54d   :  { %3652 = vmatpush3.bf16.msra.mxu0 %v4418_v51 }
 0x54e   :  { %3653 = vmatprep.subr.bf16.mxu0 %v4281_v41 }
 0x551   :  { %3655 = vmatpush3.bf16.msra.mxu0 %v4422_v54 }
 0x552   :  { %3656 = vmatprep.subr.bf16.mxu0 %v4281_v41 }
 0x555   :  { %3658 = vmatpush3.bf16.msra.mxu0 %v4426_v58 }
 0x556   :  { %3659 = vmatprep.subr.bf16.mxu0 %v4281_v41 }
 0x559   :  { %3661 = vmatpush3.bf16.msra.mxu0 %v4433_v60 }
 0x55a   :  { %3662 = vmatprep.subr.bf16.mxu0 %v4281_v41 }
 0x55d   :  { %3664 = vmatpush3.bf16.msra.mxu0 %v4437_v63 }
 0x55e   :  { %3689 = vmatprep.subr.bf16.mxu0 %v4281_v41 }
 0x613   :  { %v768_v39 = vpop.f32.mrb[6].mxu0 }
 0x614   :  { %v769_v42 = vadd.f32 %v4504_v17, %v768_v39  ;;  %v2767_v43 = vpop.f32.mrb[7].mxu0 }
 0x616   :  { %4109 = vtanh.f32 %v769_v42 }
 0x620   :  { %v4110_v45 = vpop.eup %4109 }
 0x621   :  { %2801 = vmatmul.mubr.f32.vlgmr.msra.gmra.mrb[6].mxu1 %v4110_v45 }
 0x622   :  { %3667 = vmatpush3.bf16.msra.mxu1 %v4442_v4  ;;  %2870 = vmatprep.mubr.msk.f32.mxu1 %vm4282_vm3, %v4279_v0 }
 0x623   :  { %3668 = vmatprep.subr.bf16.mxu1 %v4281_v41 }
 0x626   :  { %3670 = vmatpush3.bf16.msra.mxu1 %v4445_v6 }
 0x627   :  { %3671 = vmatprep.subr.bf16.mxu1 %v4281_v41 }
 0x62a   :  { %3673 = vmatpush3.bf16.msra.mxu1 %v4449_v9 }
 0x62b   :  { %3674 = vmatprep.subr.bf16.mxu1 %v4281_v41 }
 0x62e   :  { %3676 = vmatpush3.bf16.msra.mxu1 %v4453_v12 }
 0x62f   :  { %3677 = vmatprep.subr.bf16.mxu1 %v4281_v41 }
 0x632   :  { %3679 = vmatpush3.bf16.msra.mxu1 %v4457_v15 }
 0x633   :  { %3680 = vmatprep.subr.bf16.mxu1 %v4281_v41 }
 0x636   :  { %3682 = vmatpush3.bf16.msra.mxu1 %v4486_v2 }
 0x637   :  { %3683 = vmatprep.subr.bf16.mxu1 %v4281_v41 }
 0x63a   :  { %3685 = vmatpush3.bf16.msra.mxu1 %v4489_v7 }
 0x63b   :  { %3686 = vmatprep.subr.bf16.mxu1 %v4281_v41 }
 0x63e   :  { %3688 = vmatpush3.bf16.msra.mxu1 %v4493_v11 }
 0x63f   :  { %3713 = vmatprep.subr.bf16.mxu1 %v4281_v41 }
 0x6f4   :  { %v839_v47 = vpop.f32.mrb[6].mxu1 }
 0x6f5   :  { %v840_v49 = vadd.f32 %v4530_v23, %v839_v47  ;;  %v2802_v50 = vpop.f32.mrb[7].mxu1 }
 0x6f7   :  { %v843_v53 = vmul.f32 %v840_v49, %v4525_v22  ;;  %v988_v55 = vmul.f32 2.0, %v840_v49 }
 0x6f9   :  { %v844_v56 = vadd.f32 %v843_v53, %v4465_v61  ;;  %v989_v57 = vadd.f32 %v988_v55, %v987_v52 }
 0x6fb   :  { %2836 = vmatmul.mubr.f32.vlgmr.msra.gmra.mrb[8].mxu0 %v844_v56 }
 0x6fc   :  { %3691 = vmatpush3.bf16.msra.mxu0 %v4401_v40  ;;  %2905 = vmatprep.mubr.msk.f32.mxu0 %vm4282_vm3, %v4279_v0 }
 0x6fd   :  { %3692 = vmatprep.subr.bf16.mxu0 %v4281_v41 }
 0x700   :  { %3694 = vmatpush3.bf16.msra.mxu0 %v4407_v44 }
 0x701   :  { %3695 = vmatprep.subr.bf16.mxu0 %v4281_v41 }
 0x704   :  { %3697 = vmatpush3.bf16.msra.mxu0 %v4414_v48 }
 0x705   :  { %3698 = vmatprep.subr.bf16.mxu0 %v4281_v41 }
 0x708   :  { %3700 = vmatpush3.bf16.msra.mxu0 %v4418_v51 }
 0x709   :  { %3701 = vmatprep.subr.bf16.mxu0 %v4281_v41 }
 0x70c   :  { %3703 = vmatpush3.bf16.msra.mxu0 %v4422_v54 }
 0x70d   :  { %3704 = vmatprep.subr.bf16.mxu0 %v4281_v41 }
 0x710   :  { %3706 = vmatpush3.bf16.msra.mxu0 %v4426_v58 }
 0x711   :  { %3707 = vmatprep.subr.bf16.mxu0 %v4281_v41 }
 0x714   :  { %3709 = vmatpush3.bf16.msra.mxu0 %v4433_v60 }
 0x715   :  { %3710 = vmatprep.subr.bf16.mxu0 %v4281_v41 }
 0x718   :  { %3712 = vmatpush3.bf16.msra.mxu0 %v4437_v63 }
 0x719   :  { %3737 = vmatprep.subr.bf16.mxu0 %v4281_v41 }
 0x7ce   :  { %v911_v59 = vpop.f32.mrb[8].mxu0 }
 0x7cf   :  { %v912_v62 = vadd.f32 %v4504_v17, %v911_v59  ;;  %v2837_v1 = vpop.f32.mrb[9].mxu0 }
 0x7d1   :  { %4111 = vtanh.f32 %v912_v62 }
 0x7db   :  { %v4112_v3 = vpop.eup %4111 }
 0x7dc   :  { %2871 = vmatmul.mubr.f32.vlgmr.msra.gmra.mrb[8].mxu1 %v4112_v3 }
 0x7dd   :  { %3715 = vmatpush3.bf16.msra.mxu1 %v4442_v4  ;;  %2940 = vmatprep.mubr.msk.f32.mxu1 %vm4282_vm3, %v4279_v0 }
 0x7de   :  { %3716 = vmatprep.subr.bf16.mxu1 %v4281_v41 }
 0x7e1   :  { %3718 = vmatpush3.bf16.msra.mxu1 %v4445_v6 }
 0x7e2   :  { %3719 = vmatprep.subr.bf16.mxu1 %v4281_v41 }
 0x7e5   :  { %3721 = vmatpush3.bf16.msra.mxu1 %v4449_v9 }
 0x7e6   :  { %3722 = vmatprep.subr.bf16.mxu1 %v4281_v41 }
 0x7e9   :  { %3724 = vmatpush3.bf16.msra.mxu1 %v4453_v12 }
 0x7ea   :  { %3725 = vmatprep.subr.bf16.mxu1 %v4281_v41 }
 0x7ed   :  { %3727 = vmatpush3.bf16.msra.mxu1 %v4457_v15 }
 0x7ee   :  { %3728 = vmatprep.subr.bf16.mxu1 %v4281_v41 }
 0x7f1   :  { %3730 = vmatpush3.bf16.msra.mxu1 %v4486_v2 }
 0x7f2   :  { %3731 = vmatprep.subr.bf16.mxu1 %v4281_v41 }
 0x7f5   :  { %3733 = vmatpush3.bf16.msra.mxu1 %v4489_v7 }
 0x7f6   :  { %3734 = vmatprep.subr.bf16.mxu1 %v4281_v41 }
 0x7f9   :  { %3736 = vmatpush3.bf16.msra.mxu1 %v4493_v11 }
 0x7fa   :  { %3761 = vmatprep.subr.bf16.mxu1 %v4281_v41 }
 0x8af   :  { %v982_v5 = vpop.f32.mrb[8].mxu1 }
 0x8b0   :  { %v983_v8 = vadd.f32 %v4530_v23, %v982_v5  ;;  %v2872_v10 = vpop.f32.mrb[9].mxu1 }
 0x8b2   :  { %v990_v14 = vadd.f32 %v989_v57, %v983_v8 }
 0x8b4   :  { %v991_v16 = vmul.f32 %v990_v14, %v4661_v13 }
 0x8b6   :  { %v4665_v18 = vadd.f32 %v991_v16, %v4465_v61 }
 0x8b8   :  { %2906 = vmatmul.mubr.f32.vlgmr.msra.gmra.mrb[10].mxu0 %v4665_v18 }
 0x8b9   :  { %3739 = vmatpush3.bf16.msra.mxu0 %v4401_v40  ;;  %2975 = vmatprep.mubr.msk.f32.mxu0 %vm4282_vm3, %v4279_v0 }
 0x8ba   :  { %3740 = vmatprep.subr.bf16.mxu0 %v4281_v41 }
 0x8bd   :  { %3742 = vmatpush3.bf16.msra.mxu0 %v4407_v44 }
 0x8be   :  { %3743 = vmatprep.subr.bf16.mxu0 %v4281_v41 }
 0x8c1   :  { %3745 = vmatpush3.bf16.msra.mxu0 %v4414_v48 }
 0x8c2   :  { %3746 = vmatprep.subr.bf16.mxu0 %v4281_v41 }
 0x8c5   :  { %3748 = vmatpush3.bf16.msra.mxu0 %v4418_v51 }
 0x8c6   :  { %3749 = vmatprep.subr.bf16.mxu0 %v4281_v41 }
 0x8c9   :  { %3751 = vmatpush3.bf16.msra.mxu0 %v4422_v54 }
 0x8ca   :  { %3752 = vmatprep.subr.bf16.mxu0 %v4281_v41 }
 0x8cd   :  { %3754 = vmatpush3.bf16.msra.mxu0 %v4426_v58 }
 0x8ce   :  { %3755 = vmatprep.subr.bf16.mxu0 %v4281_v41 }
 0x8d1   :  { %3757 = vmatpush3.bf16.msra.mxu0 %v4433_v60 }
 0x8d2   :  { %3758 = vmatprep.subr.bf16.mxu0 %v4281_v41 }
 0x8d5   :  { %3760 = vmatpush3.bf16.msra.mxu0 %v4437_v63 }
 0x8d6   :  { %3785 = vmatprep.subr.bf16.mxu0 %v4281_v41 }
 0x98b   :  { %v1059_v61 = vpop.f32.mrb[10].mxu0 }
 0x98c   :  { %v1060_v19 = vadd.f32 %v4504_v17, %v1059_v61  ;;  %v2907_v20 = vpop.f32.mrb[11].mxu0 }
 0x98e   :  { %4113 = vtanh.f32 %v1060_v19 }
 0x998   :  { %v4114_v21 = vpop.eup %4113 }
 0x999   :  { %2941 = vmatmul.mubr.f32.vlgmr.msra.gmra.mrb[10].mxu1 %v4114_v21 }
 0x99a   :  { %3763 = vmatpush3.bf16.msra.mxu1 %v4442_v4  ;;  %3010 = vmatprep.mubr.msk.f32.mxu1 %vm4282_vm3, %v4279_v0 }
 0x99b   :  { %3764 = vmatprep.subr.bf16.mxu1 %v4281_v41 }
 0x99e   :  { %3766 = vmatpush3.bf16.msra.mxu1 %v4445_v6 }
 0x99f   :  { %3767 = vmatprep.subr.bf16.mxu1 %v4281_v41 }
 0x9a2   :  { %3769 = vmatpush3.bf16.msra.mxu1 %v4449_v9 }
 0x9a3   :  { %3770 = vmatprep.subr.bf16.mxu1 %v4281_v41 }
 0x9a6   :  { %3772 = vmatpush3.bf16.msra.mxu1 %v4453_v12 }
 0x9a7   :  { %3773 = vmatprep.subr.bf16.mxu1 %v4281_v41 }
 0x9aa   :  { %3775 = vmatpush3.bf16.msra.mxu1 %v4457_v15 }
 0x9ab   :  { %3776 = vmatprep.subr.bf16.mxu1 %v4281_v41 }
 0x9ae   :  { %3778 = vmatpush3.bf16.msra.mxu1 %v4486_v2 }
 0x9af   :  { %3779 = vmatprep.subr.bf16.mxu1 %v4281_v41 }
 0x9b2   :  { %3781 = vmatpush3.bf16.msra.mxu1 %v4489_v7 }
 0x9b3   :  { %3782 = vmatprep.subr.bf16.mxu1 %v4281_v41 }
 0x9b6   :  { %3784 = vmatpush3.bf16.msra.mxu1 %v4493_v11 }
 0x9b7   :  { %3809 = vmatprep.subr.bf16.mxu1 %v4281_v41 }
 0xa6c   :  { %v1130_v25 = vpop.f32.mrb[10].mxu1 }
 0xa6d   :  { %v4706_v26 = vadd.f32 %v4530_v23, %v1130_v25  ;;  %v2942_v27 = vpop.f32.mrb[11].mxu1 }
 0xa6f   :  { %v1134_v28 = vmul.f32 %v4706_v26, %v4533_v24 }
 0xa71   :  { %v1135_v29 = vadd.f32 %v1134_v28, %v4665_v18 }
 0xa73   :  { %2976 = vmatmul.mubr.f32.vlgmr.msra.gmra.mrb[12].mxu0 %v1135_v29 }
 0xa74   :  { %3787 = vmatpush3.bf16.msra.mxu0 %v4401_v40  ;;  %3045 = vmatprep.mubr.msk.f32.mxu0 %vm4282_vm3, %v4279_v0 }
 0xa75   :  { %3788 = vmatprep.subr.bf16.mxu0 %v4281_v41 }
 0xa78   :  { %3790 = vmatpush3.bf16.msra.mxu0 %v4407_v44 }
 0xa79   :  { %3791 = vmatprep.subr.bf16.mxu0 %v4281_v41 }
 0xa7c   :  { %3793 = vmatpush3.bf16.msra.mxu0 %v4414_v48 }
 0xa7d   :  { %3794 = vmatprep.subr.bf16.mxu0 %v4281_v41 }
 0xa80   :  { %3796 = vmatpush3.bf16.msra.mxu0 %v4418_v51 }
 0xa81   :  { %3797 = vmatprep.subr.bf16.mxu0 %v4281_v41 }
 0xa84   :  { %3799 = vmatpush3.bf16.msra.mxu0 %v4422_v54 }
 0xa85   :  { %3800 = vmatprep.subr.bf16.mxu0 %v4281_v41 }
 0xa88   :  { %3802 = vmatpush3.bf16.msra.mxu0 %v4426_v58 }
 0xa89   :  { %3803 = vmatprep.subr.bf16.mxu0 %v4281_v41 }
 0xa8c   :  { %3805 = vmatpush3.bf16.msra.mxu0 %v4433_v60 }
 0xa8d   :  { %3806 = vmatprep.subr.bf16.mxu0 %v4281_v41 }
 0xa90   :  { %3808 = vmatpush3.bf16.msra.mxu0 %v4437_v63 }
 0xa91   :  { %3833 = vmatprep.subr.bf16.mxu0 %v4281_v41 }
 0xb46   :  { %v1202_v30 = vpop.f32.mrb[12].mxu0 }
 0xb47   :  { %v1203_v31 = vadd.f32 %v4504_v17, %v1202_v30  ;;  %v2977_v32 = vpop.f32.mrb[13].mxu0 }
 0xb49   :  { %4115 = vtanh.f32 %v1203_v31 }
 0xb53   :  { %v4116_v33 = vpop.eup %4115 }
 0xb54   :  { %3011 = vmatmul.mubr.f32.vlgmr.msra.gmra.mrb[12].mxu1 %v4116_v33 }
 0xb55   :  { %3811 = vmatpush3.bf16.msra.mxu1 %v4442_v4  ;;  %3080 = vmatprep.mubr.msk.f32.mxu1 %vm4282_vm3, %v4279_v0 }
 0xb56   :  { %3812 = vmatprep.subr.bf16.mxu1 %v4281_v41 }
 0xb59   :  { %3814 = vmatpush3.bf16.msra.mxu1 %v4445_v6 }
 0xb5a   :  { %3815 = vmatprep.subr.bf16.mxu1 %v4281_v41 }
 0xb5d   :  { %3817 = vmatpush3.bf16.msra.mxu1 %v4449_v9 }
 0xb5e   :  { %3818 = vmatprep.subr.bf16.mxu1 %v4281_v41 }
 0xb61   :  { %3820 = vmatpush3.bf16.msra.mxu1 %v4453_v12 }
 0xb62   :  { %3821 = vmatprep.subr.bf16.mxu1 %v4281_v41 }
 0xb65   :  { %3823 = vmatpush3.bf16.msra.mxu1 %v4457_v15 }
 0xb66   :  { %3824 = vmatprep.subr.bf16.mxu1 %v4281_v41 }
 0xb69   :  { %3826 = vmatpush3.bf16.msra.mxu1 %v4486_v2 }
 0xb6a   :  { %3827 = vmatprep.subr.bf16.mxu1 %v4281_v41 }
 0xb6d   :  { %3829 = vmatpush3.bf16.msra.mxu1 %v4489_v7 }
 0xb6e   :  { %3830 = vmatprep.subr.bf16.mxu1 %v4281_v41 }
 0xb71   :  { %3832 = vmatpush3.bf16.msra.mxu1 %v4493_v11 }
 0xb72   :  { %3857 = vmatprep.subr.bf16.mxu1 %v4281_v41 }
 0xc27   :  { %v1273_v34 = vpop.f32.mrb[12].mxu1 }
 0xc28   :  { %v1274_v35 = vadd.f32 %v4530_v23, %v1273_v34  ;;  %v3012_v36 = vpop.f32.mrb[13].mxu1 }
 0xc2a   :  { %v1277_v37 = vmul.f32 %v1274_v35, %v4533_v24  ;;  %v1563_v46 = vmul.f32 2.0, %v1274_v35 }
 0xc2c   :  { %v1278_v38 = vadd.f32 %v1277_v37, %v4665_v18  ;;  %v1564_v52 = vadd.f32 %v1563_v46, %v4706_v26 }
 0xc2e   :  { %3046 = vmatmul.mubr.f32.vlgmr.msra.gmra.mrb[14].mxu0 %v1278_v38 }
 0xc2f   :  { %3835 = vmatpush3.bf16.msra.mxu0 %v4401_v40  ;;  %3115 = vmatprep.mubr.msk.f32.mxu0 %vm4282_vm3, %v4279_v0 }
 0xc30   :  { %3836 = vmatprep.subr.bf16.mxu0 %v4281_v41 }
 0xc33   :  { %3838 = vmatpush3.bf16.msra.mxu0 %v4407_v44 }
 0xc34   :  { %3839 = vmatprep.subr.bf16.mxu0 %v4281_v41 }
 0xc37   :  { %3841 = vmatpush3.bf16.msra.mxu0 %v4414_v48 }
 0xc38   :  { %3842 = vmatprep.subr.bf16.mxu0 %v4281_v41 }
 0xc3b   :  { %3844 = vmatpush3.bf16.msra.mxu0 %v4418_v51 }
 0xc3c   :  { %3845 = vmatprep.subr.bf16.mxu0 %v4281_v41 }
 0xc3f   :  { %3847 = vmatpush3.bf16.msra.mxu0 %v4422_v54 }
 0xc40   :  { %3848 = vmatprep.subr.bf16.mxu0 %v4281_v41 }
 0xc43   :  { %3850 = vmatpush3.bf16.msra.mxu0 %v4426_v58 }
 0xc44   :  { %3851 = vmatprep.subr.bf16.mxu0 %v4281_v41 }
 0xc47   :  { %3853 = vmatpush3.bf16.msra.mxu0 %v4433_v60 }
 0xc48   :  { %3854 = vmatprep.subr.bf16.mxu0 %v4281_v41 }
 0xc4b   :  { %3856 = vmatpush3.bf16.msra.mxu0 %v4437_v63 }
 0xc4c   :  { %3881 = vmatprep.subr.bf16.mxu0 %v4281_v41 }
 0xd01   :  { %v1345_v39 = vpop.f32.mrb[14].mxu0 }
 0xd02   :  { %v1346_v42 = vadd.f32 %v4504_v17, %v1345_v39  ;;  %v3047_v43 = vpop.f32.mrb[15].mxu0 }
 0xd04   :  { %4117 = vtanh.f32 %v1346_v42 }
 0xd0e   :  { %v4118_v45 = vpop.eup %4117 }
 0xd0f   :  { %3081 = vmatmul.mubr.f32.vlgmr.msra.gmra.mrb[14].mxu1 %v4118_v45 }
 0xd10   :  { %3859 = vmatpush3.bf16.msra.mxu1 %v4442_v4  ;;  %3150 = vmatprep.mubr.msk.f32.mxu1 %vm4282_vm3, %v4279_v0 }
 0xd11   :  { %3860 = vmatprep.subr.bf16.mxu1 %v4281_v41 }
 0xd14   :  { %3862 = vmatpush3.bf16.msra.mxu1 %v4445_v6 }
 0xd15   :  { %3863 = vmatprep.subr.bf16.mxu1 %v4281_v41 }
 0xd18   :  { %3865 = vmatpush3.bf16.msra.mxu1 %v4449_v9 }
 0xd19   :  { %3866 = vmatprep.subr.bf16.mxu1 %v4281_v41 }
 0xd1c   :  { %3868 = vmatpush3.bf16.msra.mxu1 %v4453_v12 }
 0xd1d   :  { %3869 = vmatprep.subr.bf16.mxu1 %v4281_v41 }
 0xd20   :  { %3871 = vmatpush3.bf16.msra.mxu1 %v4457_v15 }
 0xd21   :  { %3872 = vmatprep.subr.bf16.mxu1 %v4281_v41 }
 0xd24   :  { %3874 = vmatpush3.bf16.msra.mxu1 %v4486_v2 }
 0xd25   :  { %3875 = vmatprep.subr.bf16.mxu1 %v4281_v41 }
 0xd28   :  { %3877 = vmatpush3.bf16.msra.mxu1 %v4489_v7 }
 0xd29   :  { %3878 = vmatprep.subr.bf16.mxu1 %v4281_v41 }
 0xd2c   :  { %3880 = vmatpush3.bf16.msra.mxu1 %v4493_v11 }
 0xd2d   :  { %3905 = vmatprep.subr.bf16.mxu1 %v4281_v41 }
 0xde2   :  { %v1416_v47 = vpop.f32.mrb[14].mxu1 }
 0xde3   :  { %v1417_v49 = vadd.f32 %v4530_v23, %v1416_v47  ;;  %v3082_v50 = vpop.f32.mrb[15].mxu1 }
 0xde5   :  { %v1420_v53 = vmul.f32 %v1417_v49, %v4525_v22  ;;  %v1565_v55 = vmul.f32 2.0, %v1417_v49 }
 0xde7   :  { %v1421_v56 = vadd.f32 %v1420_v53, %v4665_v18  ;;  %v1566_v57 = vadd.f32 %v1565_v55, %v1564_v52 }
 0xde9   :  { %3116 = vmatmul.mubr.f32.vlgmr.msra.gmra.mrb[16].mxu0 %v1421_v56 }
 0xdea   :  { %3883 = vmatpush3.bf16.msra.mxu0 %v4401_v40  ;;  %3185 = vmatprep.mubr.msk.f32.mxu0 %vm4282_vm3, %v4279_v0 }
 0xdeb   :  { %3884 = vmatprep.subr.bf16.mxu0 %v4281_v41 }
 0xdee   :  { %3886 = vmatpush3.bf16.msra.mxu0 %v4407_v44 }
 0xdef   :  { %3887 = vmatprep.subr.bf16.mxu0 %v4281_v41 }
 0xdf2   :  { %3889 = vmatpush3.bf16.msra.mxu0 %v4414_v48 }
 0xdf3   :  { %3890 = vmatprep.subr.bf16.mxu0 %v4281_v41 }
 0xdf6   :  { %3892 = vmatpush3.bf16.msra.mxu0 %v4418_v51 }
 0xdf7   :  { %3893 = vmatprep.subr.bf16.mxu0 %v4281_v41 }
 0xdfa   :  { %3895 = vmatpush3.bf16.msra.mxu0 %v4422_v54 }
 0xdfb   :  { %3896 = vmatprep.subr.bf16.mxu0 %v4281_v41 }
 0xdfe   :  { %3898 = vmatpush3.bf16.msra.mxu0 %v4426_v58 }
 0xdff   :  { %3899 = vmatprep.subr.bf16.mxu0 %v4281_v41 }
 0xe02   :  { %3901 = vmatpush3.bf16.msra.mxu0 %v4433_v60 }
 0xe03   :  { %3902 = vmatprep.subr.bf16.mxu0 %v4281_v41 }
 0xe06   :  { %3904 = vmatpush3.bf16.msra.mxu0 %v4437_v63 }
 0xe07   :  { %3929 = vmatprep.subr.bf16.mxu0 %v4281_v41 }
 0xebc   :  { %v1488_v59 = vpop.f32.mrb[16].mxu0 }
 0xebd   :  { %v1489_v62 = vadd.f32 %v4504_v17, %v1488_v59  ;;  %v3117_v1 = vpop.f32.mrb[17].mxu0 }
 0xebf   :  { %4119 = vtanh.f32 %v1489_v62 }
 0xec9   :  { %v4120_v3 = vpop.eup %4119 }
 0xeca   :  { %3151 = vmatmul.mubr.f32.vlgmr.msra.gmra.mrb[16].mxu1 %v4120_v3 }
 0xecb   :  { %3907 = vmatpush3.bf16.msra.mxu1 %v4442_v4  ;;  %3220 = vmatprep.mubr.msk.f32.mxu1 %vm4282_vm3, %v4279_v0 }
 0xecc   :  { %3908 = vmatprep.subr.bf16.mxu1 %v4281_v41 }
 0xecf   :  { %3910 = vmatpush3.bf16.msra.mxu1 %v4445_v6 }
 0xed0   :  { %3911 = vmatprep.subr.bf16.mxu1 %v4281_v41 }
 0xed3   :  { %3913 = vmatpush3.bf16.msra.mxu1 %v4449_v9 }
 0xed4   :  { %3914 = vmatprep.subr.bf16.mxu1 %v4281_v41 }
 0xed7   :  { %3916 = vmatpush3.bf16.msra.mxu1 %v4453_v12 }
 0xed8   :  { %3917 = vmatprep.subr.bf16.mxu1 %v4281_v41 }
 0xedb   :  { %3919 = vmatpush3.bf16.msra.mxu1 %v4457_v15 }
 0xedc   :  { %3920 = vmatprep.subr.bf16.mxu1 %v4281_v41 }
 0xedf   :  { %3922 = vmatpush3.bf16.msra.mxu1 %v4486_v2 }
 0xee0   :  { %3923 = vmatprep.subr.bf16.mxu1 %v4281_v41 }
 0xee3   :  { %3925 = vmatpush3.bf16.msra.mxu1 %v4489_v7 }
 0xee4   :  { %3926 = vmatprep.subr.bf16.mxu1 %v4281_v41 }
 0xee7   :  { %3928 = vmatpush3.bf16.msra.mxu1 %v4493_v11 }
 0xee8   :  { %3953 = vmatprep.subr.bf16.mxu1 %v4281_v41 }
 0xf9d   :  { %v1559_v5 = vpop.f32.mrb[16].mxu1 }
 0xf9e   :  { %v1560_v8 = vadd.f32 %v4530_v23, %v1559_v5  ;;  %v3152_v10 = vpop.f32.mrb[17].mxu1 }
 0xfa0   :  { %v1567_v14 = vadd.f32 %v1566_v57, %v1560_v8 }
 0xfa2   :  { %v1568_v16 = vmul.f32 %v1567_v14, %v4661_v13 }
 0xfa4   :  { %v4832_v61 = vadd.f32 %v1568_v16, %v4665_v18 }
 0xfa6   :  { %3186 = vmatmul.mubr.f32.vlgmr.msra.gmra.mrb[18].mxu0 %v4832_v61 }
 0xfa7   :  { %3931 = vmatpush3.bf16.msra.mxu0 %v4401_v40  ;;  %3255 = vmatprep.mubr.msk.f32.mxu0 %vm4282_vm3, %v4279_v0 }
 0xfa8   :  { %3932 = vmatprep.subr.bf16.mxu0 %v4281_v41 }
 0xfab   :  { %3934 = vmatpush3.bf16.msra.mxu0 %v4407_v44 }
 0xfac   :  { %3935 = vmatprep.subr.bf16.mxu0 %v4281_v41 }
 0xfaf   :  { %3937 = vmatpush3.bf16.msra.mxu0 %v4414_v48 }
 0xfb0   :  { %3938 = vmatprep.subr.bf16.mxu0 %v4281_v41 }
 0xfb3   :  { %3940 = vmatpush3.bf16.msra.mxu0 %v4418_v51 }
 0xfb4   :  { %3941 = vmatprep.subr.bf16.mxu0 %v4281_v41 }
 0xfb7   :  { %3943 = vmatpush3.bf16.msra.mxu0 %v4422_v54 }
 0xfb8   :  { %3944 = vmatprep.subr.bf16.mxu0 %v4281_v41 }
 0xfbb   :  { %3946 = vmatpush3.bf16.msra.mxu0 %v4426_v58 }
 0xfbc   :  { %3947 = vmatprep.subr.bf16.mxu0 %v4281_v41 }
 0xfbf   :  { %3949 = vmatpush3.bf16.msra.mxu0 %v4433_v60 }
 0xfc0   :  { %3950 = vmatprep.subr.bf16.mxu0 %v4281_v41 }
 0xfc3   :  { %3952 = vmatpush3.bf16.msra.mxu0 %v4437_v63 }
 0xfc4   :  { %3977 = vmatprep.subr.bf16.mxu0 %v4281_v41 }
0x1079   :  { %v1636_v18 = vpop.f32.mrb[18].mxu0 }
0x107a   :  { %v1637_v19 = vadd.f32 %v4504_v17, %v1636_v18  ;;  %v3187_v20 = vpop.f32.mrb[19].mxu0 }
0x107c   :  { %4121 = vtanh.f32 %v1637_v19 }
0x1086   :  { %v4122_v21 = vpop.eup %4121 }
0x1087   :  { %3221 = vmatmul.mubr.f32.vlgmr.msra.gmra.mrb[18].mxu1 %v4122_v21 }
0x1088   :  { %3955 = vmatpush3.bf16.msra.mxu1 %v4442_v4  ;;  %3290 = vmatprep.mubr.msk.f32.mxu1 %vm4282_vm3, %v4279_v0 }
0x1089   :  { %3956 = vmatprep.subr.bf16.mxu1 %v4281_v41 }
0x108c   :  { %3958 = vmatpush3.bf16.msra.mxu1 %v4445_v6 }
0x108d   :  { %3959 = vmatprep.subr.bf16.mxu1 %v4281_v41 }
0x1090   :  { %3961 = vmatpush3.bf16.msra.mxu1 %v4449_v9 }
0x1091   :  { %3962 = vmatprep.subr.bf16.mxu1 %v4281_v41 }
0x1094   :  { %3964 = vmatpush3.bf16.msra.mxu1 %v4453_v12 }
0x1095   :  { %3965 = vmatprep.subr.bf16.mxu1 %v4281_v41 }
0x1098   :  { %3967 = vmatpush3.bf16.msra.mxu1 %v4457_v15 }
0x1099   :  { %3968 = vmatprep.subr.bf16.mxu1 %v4281_v41 }
0x109c   :  { %3970 = vmatpush3.bf16.msra.mxu1 %v4486_v2 }
0x109d   :  { %3971 = vmatprep.subr.bf16.mxu1 %v4281_v41 }
0x10a0   :  { %3973 = vmatpush3.bf16.msra.mxu1 %v4489_v7 }
0x10a1   :  { %3974 = vmatprep.subr.bf16.mxu1 %v4281_v41 }
0x10a4   :  { %3976 = vmatpush3.bf16.msra.mxu1 %v4493_v11 }
0x10a5   :  { %4001 = vmatprep.subr.bf16.mxu1 %v4281_v41 }
0x115a   :  { %v1707_v25 = vpop.f32.mrb[18].mxu1 }
0x115b   :  { %v4873_v26 = vadd.f32 %v4530_v23, %v1707_v25  ;;  %v3222_v27 = vpop.f32.mrb[19].mxu1 }
0x115d   :  { %v1711_v28 = vmul.f32 %v4873_v26, %v4533_v24 }
0x115f   :  { %v1712_v29 = vadd.f32 %v1711_v28, %v4832_v61 }
0x1161   :  { %3256 = vmatmul.mubr.f32.vlgmr.msra.gmra.mrb[20].mxu0 %v1712_v29 }
0x1162   :  { %3979 = vmatpush3.bf16.msra.mxu0 %v4401_v40  ;;  %3325 = vmatprep.mubr.msk.f32.mxu0 %vm4282_vm3, %v4279_v0 }
0x1163   :  { %3980 = vmatprep.subr.bf16.mxu0 %v4281_v41 }
0x1166   :  { %3982 = vmatpush3.bf16.msra.mxu0 %v4407_v44 }
0x1167   :  { %3983 = vmatprep.subr.bf16.mxu0 %v4281_v41 }
0x116a   :  { %3985 = vmatpush3.bf16.msra.mxu0 %v4414_v48 }
0x116b   :  { %3986 = vmatprep.subr.bf16.mxu0 %v4281_v41 }
0x116e   :  { %3988 = vmatpush3.bf16.msra.mxu0 %v4418_v51 }
0x116f   :  { %3989 = vmatprep.subr.bf16.mxu0 %v4281_v41 }
0x1172   :  { %3991 = vmatpush3.bf16.msra.mxu0 %v4422_v54 }
0x1173   :  { %3992 = vmatprep.subr.bf16.mxu0 %v4281_v41 }
0x1176   :  { %3994 = vmatpush3.bf16.msra.mxu0 %v4426_v58 }
0x1177   :  { %3995 = vmatprep.subr.bf16.mxu0 %v4281_v41 }
0x117a   :  { %3997 = vmatpush3.bf16.msra.mxu0 %v4433_v60 }
0x117b   :  { %3998 = vmatprep.subr.bf16.mxu0 %v4281_v41 }
0x117e   :  { %4000 = vmatpush3.bf16.msra.mxu0 %v4437_v63 }
0x117f   :  { %4025 = vmatprep.subr.bf16.mxu0 %v4281_v41 }
0x1234   :  { %v1779_v30 = vpop.f32.mrb[20].mxu0 }
0x1235   :  { %v1780_v31 = vadd.f32 %v4504_v17, %v1779_v30  ;;  %v3257_v32 = vpop.f32.mrb[21].mxu0 }
0x1237   :  { %4123 = vtanh.f32 %v1780_v31 }
0x1241   :  { %v4124_v33 = vpop.eup %4123 }
0x1242   :  { %3291 = vmatmul.mubr.f32.vlgmr.msra.gmra.mrb[20].mxu1 %v4124_v33 }
0x1243   :  { %4003 = vmatpush3.bf16.msra.mxu1 %v4442_v4  ;;  %3360 = vmatprep.mubr.msk.f32.mxu1 %vm4282_vm3, %v4279_v0 }
0x1244   :  { %4004 = vmatprep.subr.bf16.mxu1 %v4281_v41 }
0x1247   :  { %4006 = vmatpush3.bf16.msra.mxu1 %v4445_v6 }
0x1248   :  { %4007 = vmatprep.subr.bf16.mxu1 %v4281_v41 }
0x124b   :  { %4009 = vmatpush3.bf16.msra.mxu1 %v4449_v9 }
0x124c   :  { %4010 = vmatprep.subr.bf16.mxu1 %v4281_v41 }
0x124f   :  { %4012 = vmatpush3.bf16.msra.mxu1 %v4453_v12 }
0x1250   :  { %4013 = vmatprep.subr.bf16.mxu1 %v4281_v41 }
0x1253   :  { %4015 = vmatpush3.bf16.msra.mxu1 %v4457_v15 }
0x1254   :  { %4016 = vmatprep.subr.bf16.mxu1 %v4281_v41 }
0x1257   :  { %4018 = vmatpush3.bf16.msra.mxu1 %v4486_v2 }
0x1258   :  { %4019 = vmatprep.subr.bf16.mxu1 %v4281_v41 }
0x125b   :  { %4021 = vmatpush3.bf16.msra.mxu1 %v4489_v7 }
0x125c   :  { %4022 = vmatprep.subr.bf16.mxu1 %v4281_v41 }
0x125f   :  { %4024 = vmatpush3.bf16.msra.mxu1 %v4493_v11 }
0x1260   :  { %4049 = vmatprep.subr.bf16.mxu1 %v4281_v41 }
0x1315   :  { %v1850_v34 = vpop.f32.mrb[20].mxu1 }
0x1316   :  { %v1851_v35 = vadd.f32 %v4530_v23, %v1850_v34  ;;  %v3292_v36 = vpop.f32.mrb[21].mxu1 }
0x1318   :  { %v1854_v37 = vmul.f32 %v1851_v35, %v4533_v24 }
0x131a   :  { %v1855_v38 = vadd.f32 %v1854_v37, %v4832_v61 }
0x131c   :  { %3326 = vmatmul.mubr.f32.vlgmr.msra.gmra.mrb[22].mxu0 %v1855_v38 }
0x131d   :  { %4027 = vmatpush3.bf16.msra.mxu0 %v4401_v40  ;;  %3395 = vmatprep.mubr.msk.f32.mxu0 %vm4282_vm3, %v4279_v0 }
0x131e   :  { %4028 = vmatprep.subr.bf16.mxu0 %v4281_v41 }
0x1321   :  { %4030 = vmatpush3.bf16.msra.mxu0 %v4407_v44 }
0x1322   :  { %4031 = vmatprep.subr.bf16.mxu0 %v4281_v41 }
0x1325   :  { %4033 = vmatpush3.bf16.msra.mxu0 %v4414_v48 }
0x1326   :  { %4034 = vmatprep.subr.bf16.mxu0 %v4281_v41 }
0x1329   :  { %4036 = vmatpush3.bf16.msra.mxu0 %v4418_v51 }
0x132a   :  { %4037 = vmatprep.subr.bf16.mxu0 %v4281_v41 }
0x132d   :  { %4039 = vmatpush3.bf16.msra.mxu0 %v4422_v54 }
0x132e   :  { %4040 = vmatprep.subr.bf16.mxu0 %v4281_v41 }
0x1331   :  { %4042 = vmatpush3.bf16.msra.mxu0 %v4426_v58 }
0x1332   :  { %4043 = vmatprep.subr.bf16.mxu0 %v4281_v41 }
0x1335   :  { %4045 = vmatpush3.bf16.msra.mxu0 %v4433_v60 }
0x1336   :  { %4046 = vmatprep.subr.bf16.mxu0 %v4281_v41 }
0x1339   :  { %4048 = vmatpush3.bf16.msra.mxu0 %v4437_v63 }
0x13ef   :  { %v1922_v40 = vpop.f32.mrb[22].mxu0 }
0x13f0   :  { %v1923_v44 = vadd.f32 %v4504_v17, %v1922_v40  ;;  %v3327_v48 = vpop.f32.mrb[23].mxu0 }
0x13f2   :  { %4125 = vtanh.f32 %v1923_v44 }
0x13fc   :  { %v4126_v51 = vpop.eup %4125 }
0x13fd   :  { %3361 = vmatmul.mubr.f32.vlgmr.msra.gmra.mrb[22].mxu1 %v4126_v51 }
0x13fe   :  { %4051 = vmatpush3.bf16.msra.mxu1 %v4442_v4  ;;  %3430 = vmatprep.mubr.msk.f32.mxu1 %vm4282_vm3, %v4279_v0  ;;  %v2140_v0 = vmul.f32 2.0, %v1851_v35 }
0x13ff   :  { %4052 = vmatprep.subr.bf16.mxu1 %v4281_v41 }
0x1400   :  { %v2141_v63 = vadd.f32 %v2140_v0, %v4873_v26 }
0x1402   :  { %4054 = vmatpush3.bf16.msra.mxu1 %v4445_v6 }
0x1403   :  { %4055 = vmatprep.subr.bf16.mxu1 %v4281_v41 }
0x1406   :  { %4057 = vmatpush3.bf16.msra.mxu1 %v4449_v9 }
0x1407   :  { %4058 = vmatprep.subr.bf16.mxu1 %v4281_v41 }
0x140a   :  { %4060 = vmatpush3.bf16.msra.mxu1 %v4453_v12 }
0x140b   :  { %4061 = vmatprep.subr.bf16.mxu1 %v4281_v41 }
0x140e   :  { %4063 = vmatpush3.bf16.msra.mxu1 %v4457_v15 }
0x140f   :  { %4064 = vmatprep.subr.bf16.mxu1 %v4281_v41 }
0x1412   :  { %4066 = vmatpush3.bf16.msra.mxu1 %v4486_v2 }
0x1413   :  { %4067 = vmatprep.subr.bf16.mxu1 %v4281_v41 }
0x1416   :  { %4069 = vmatpush3.bf16.msra.mxu1 %v4489_v7 }
0x1417   :  { %4070 = vmatprep.subr.bf16.mxu1 %v4281_v41 }
0x141a   :  { %4072 = vmatpush3.bf16.msra.mxu1 %v4493_v11 }
0x14d0   :  { %v1993_v54 = vpop.f32.mrb[22].mxu1 }
0x14d1   :  { %v1994_v58 = vadd.f32 %v4530_v23, %v1993_v54  ;;  %v3362_v60 = vpop.f32.mrb[23].mxu1 }
0x14d3   :  { %v1997_v4 = vmul.f32 %v1994_v58, %v4525_v22  ;;  %v2142_v6 = vmul.f32 2.0, %v1994_v58 }
0x14d5   :  { %v1998_v9 = vadd.f32 %v1997_v4, %v4832_v61  ;;  %v2143_v12 = vadd.f32 %v2142_v6, %v2141_v63 }
0x14d7   :  { %3396 = vmatmul.mubr.f32.vlgmr.msra.gmra.mrb[24].mxu0 %v1998_v9 }
0x15aa   :  { %v2065_v15 = vpop.f32.mrb[24].mxu0 }
0x15ab   :  { %v2066_v2 = vadd.f32 %v4504_v17, %v2065_v15  ;;  %v3397_v41 = vpop.f32.mrb[25].mxu0 }
0x15ad   :  { %4127 = vtanh.f32 %v2066_v2 }
0x15b7   :  { %v4128_v7 = vpop.eup %4127 }
0x15b8   :  { %3431 = vmatmul.mubr.f32.vlgmr.msra.gmra.mrb[24].mxu1 %v4128_v7 }
0x15b9   :  { %4228 = shalt.err (!%p4225_p8)
}
0x15ba   :  { %s4229_s20 = scalar_lea.hbm %s4996_s11, 128 }
0x15bb   :  { %p4230_p9 = scmp.ne.s32.totalorder %s4996_s11, %s4229_s20  ;;  %p4233_p10 = scmp.lt.u32.totalorder %s4229_s20, %s4996_s11 }
0x15bd   :  { %p4235_p11 = pnand %p4233_p10, %p4230_p9 }
0x15bf   :  { %4238 = shalt.err (!%p4235_p11)
}
0x15c0   :  { %2168 = dma.vmem_to_hbm [thread:$0]  %s2166_s13, 128, %s4996_s11, [#allocation14]  }
0x15c1   :  { %s4285_s25 = smov [#allocation12]  }
0x15c2   :  { %s2155_s26 = sshll.u32 %s4285_s25, 4  ;;  %s2156_s26 = int_to_ptr.vmem [resolvable:$true] %s2155_s26 }
0x15c3   :  { %s4239_s6 = scalar_lea.vmem %s2156_s26, 128  ;;  %p4244_p13 = scmp.lt.s32.totalorder %s2156_s26, %s2156_s26 }
0x15c4   :  { %p4240_p12 = scmp.ne.s32.totalorder %s2156_s26, %s4239_s6  ;;  %p4245_p0 = scmp.lt.s32.totalorder %s4239_s6, %s4239_s6 }
0x15c6   :  { %p4246_p1 = por %p4245_p0, %p4244_p13 }
0x15c8   :  { %p4247_p2 = pnand %p4246_p1, %p4240_p12 }
0x168b   :  { %v2136_v11 = vpop.f32.mrb[24].mxu1 }
0x168c   :  { %v2137_v17 = vadd.f32 %v4530_v23, %v2136_v11  ;;  %v3432_v22 = vpop.f32.mrb[25].mxu1 }
0x168e   :  { %v2144_v24 = vadd.f32 %v2143_v12, %v2137_v17 }
0x1690   :  { %v2145_v39 = vmul.f32 %v2144_v24, %v4661_v13 }
0x1692   :  { %v2146_v42 = vadd.f32 %v2145_v39, %v4832_v61 }
0x1694   :  { %2147 = vst [vmem:[#allocation12] sm:$0xff] %v2146_v42 }
0x1695   :  { %4250 = shalt.err (!%p4247_p2)
}
0x1696   :  { %s4251_s27 = scalar_lea.hbm %s4995_s10, 128 }
0x1697   :  { %p4252_p3 = scmp.ne.s32.totalorder %s4995_s10, %s4251_s27  ;;  %p4255_p4 = scmp.lt.u32.totalorder %s4251_s27, %s4995_s10 }
0x1699   :  { %p4257_p5 = pnand %p4255_p4, %p4252_p3 }
0x169b   :  { %4260 = shalt.err (!%p4257_p5)
}
0x169c   :  { %2158 = dma.vmem_to_hbm [thread:$0]  %s2156_s26, 128, %s4995_s10, [#allocation6]  }
0x169d   :  { %4267 = dma.done.wait [#allocation6], 128  }
0x169e   :  { %4268 = vsyncadd [#allocation6], 4294967168 }
0x169f   :  { %4269 = dma.done.wait [#allocation14], 128  }
0x16a0   :  { %4270 = vsyncadd [#allocation14], 4294967168 }
0x16a1   :  { %2175 = vsyncpa [#allocation5], 1 }
0x16a2   :  { %2176 = vsyncpa [#allocation8], 1 }
0x16a3   :  { %2177 = vsyncpa [#allocation11], 1 }
0x16a4   :  { %2178 = vsyncpa [#allocation6], 1 }
0x16a5   :  { %2179 = vsyncpa [#allocation14], 1 }

</bundles_post_ra>
